<compile_context>
chip_gen: v6e
topology: v6e:2x2x1
jax: 0.10.0
libtpu: 0.0.40
codegen_flags: <defaults>
</compile_context>

<pallas_src>
import functools
import math

import jax
import jax.numpy as jnp
from jax import lax
from jax.experimental import pallas as pl
from jax.experimental.pallas import tpu as pltpu


# ---------------------------------------------------------------------------
# in-kernel helpers
# ---------------------------------------------------------------------------
def _layernorm(x, gamma, beta, eps=1e-5):
    # single-pass biased variance: E[x^2] - E[x]^2  (halves lane-reduction passes)
    mean = jnp.mean(x, axis=-1, keepdims=True)
    mean_sq = jnp.mean(x * x, axis=-1, keepdims=True)
    var = mean_sq - mean * mean
    return (x - mean) * lax.rsqrt(var + eps) * gamma + beta


# ---------------------------------------------------------------------------
# fused kernel: positional encoding + all EncodeLayers, grid over batch
# ---------------------------------------------------------------------------
def encoder_stack_kernel(x_ref, pe_ref, wqkv_ref, wo_ref, bo_ref,
                         g1_ref, bt1_ref, w1_ref, b1_ref, w2_ref, b2_ref,
                         g2_ref, bt2_ref, o_ref, ctx_ref,
                         *, num_layers, n_heads, head_dim, pe_scale):
    D = x_ref.shape[-1]
    H, Dh = n_heads, head_dim

    # fused sinusoidal positional encoding: emb * sqrt(D) + pe   (f32)
    x = x_ref[0] * pe_scale + pe_ref[...]

    for l in range(num_layers):                      # static unroll (num_layers is small)
        xb = x.astype(jnp.bfloat16)

        # --- fused lane-dense QKV projection: (S,D) @ (D,3D), bf16 in / f32 acc -------
        # (could emit bf16 directly via preferred_element_type at scale; f32 + cast is
        #  the conservative, always-lowerable path and costs nothing at these shapes)
        qkv = jnp.dot(xb, wqkv_ref[l], preferred_element_type=jnp.float32)
        qkv = qkv.astype(jnp.bfloat16)               # (S, 3D)

        # --- per-head attention via static lane slices (no reshape / transpose) -------
        # 1/sqrt(Dh) is already folded into Wq, so scores need no extra scaling.
        # TODO(synk): for large S, replace with flash-style online softmax over KV tiles
        #             so the (S,S) scores never materialize (required on v7x at scale).
        for h in range(H):
            q = qkv[:, h * Dh:(h + 1) * Dh]                      # (S, Dh) bf16
            k = qkv[:, D + h * Dh: D + (h + 1) * Dh]             # (S, Dh) bf16
            v = qkv[:, 2 * D + h * Dh: 2 * D + (h + 1) * Dh]     # (S, Dh) bf16

            s = lax.dot_general(q, k, (((1,), (1,)), ((), ())),
                                preferred_element_type=jnp.float32)   # (S, S) f32
            s = s - jnp.max(s, axis=-1, keepdims=True)
            p = jnp.exp(s)
            p = p * pl.reciprocal(jnp.sum(p, axis=-1, keepdims=True), approx=True)

            ctxh = jnp.dot(p.astype(jnp.bfloat16), v,
                           preferred_element_type=jnp.float32)         # (S, Dh) f32
            ctx_ref[:, h * Dh:(h + 1) * Dh] = ctxh                     # assemble (S, D)

        # --- output projection: head reduction folded into one (S,D)@(D,D) MXU op -----
        attn = jnp.dot(ctx_ref[...].astype(jnp.bfloat16), wo_ref[l],
                       preferred_element_type=jnp.float32) + bo_ref[l]

        # quirk: value = attention_out.expand_as(attention_out) -> residual = 2 * attn
        resid = attn + attn
        x1 = _layernorm(resid, g1_ref[l], bt1_ref[l])          # dropout1: identity (eval)

        # --- feed-forward ---------------------------------------------------------
        h1 = jnp.dot(x1.astype(jnp.bfloat16), w1_ref[l],
                     preferred_element_type=jnp.float32) + b1_ref[l]
        h1 = jnp.maximum(h1, 0.0)                               # ReLU in f32
        ff = jnp.dot(h1.astype(jnp.bfloat16), w2_ref[l],
                     preferred_element_type=jnp.float32) + b2_ref[l]
        x = _layernorm(ff + x1, g2_ref[l], bt2_ref[l])          # dropout2: identity (eval)

    o_ref[0] = x.astype(o_ref.dtype)


def encoder_stack(embed, pe, params, n_heads):
    """embed: (B,S,D) f32 embedding output; params: dict of (L, ...) stacked weights."""
    B, S, D = embed.shape
    num_layers = params["wqkv"].shape[0]
    head_dim = D // n_heads

    weight_names = ["wqkv", "wo", "bo", "g1", "bt1",
                    "w1", "b1", "w2", "b2", "g2", "bt2"]
    weights = [params[n] for n in weight_names]

    def const_spec(arr):
        zeros = (0,) * arr.ndim
        return pl.BlockSpec(arr.shape, lambda b, _z=zeros: _z)

    in_specs = [pl.BlockSpec((1, S, D), lambda b: (b, 0, 0)),   # per-batch activation
                pl.BlockSpec((S, D), lambda b: (0, 0))]         # positional encoding
    in_specs += [const_spec(w) for w in weights]                # constant weights

    kernel = functools.partial(
        encoder_stack_kernel,
        num_layers=num_layers, n_heads=n_heads, head_dim=head_dim,
        pe_scale=float(math.sqrt(D)))

    return pl.pallas_call(
        kernel,
        out_shape=jax.ShapeDtypeStruct((B, S, D), jnp.float32),
        grid=(B,),
        in_specs=in_specs,
        out_specs=pl.BlockSpec((1, S, D), lambda b: (b, 0, 0)),
        scratch_shapes=[pltpu.VMEM((S, D), jnp.float32)],       # per-head context assembly
        compiler_params=pltpu.CompilerParams(
            dimension_semantics=("parallel",),
            vmem_limit_bytes=32 * 1024 * 1024),
    )(embed, pe, *weights)


# ---------------------------------------------------------------------------
# parameter construction (deterministic, synthetic)
# ---------------------------------------------------------------------------
def make_params(key, vocab_size, embed_dim, num_layers, expansion_factor, n_heads):
    D = embed_dim
    F = expansion_factor * D
    Dh = D // n_heads
    keys = jax.random.split(key, 1 + max(num_layers, 1))

    emb_table = 0.02 * jax.random.normal(keys[0], (vocab_size, D), jnp.float32)

    per_layer = []
    for l in range(num_layers):
        ks = jax.random.split(keys[1 + l], 8)
        wq = 0.05 * jax.random.normal(ks[0], (D, D), jnp.float32)
        wk = 0.05 * jax.random.normal(ks[1], (D, D), jnp.float32)
        wv = 0.05 * jax.random.normal(ks[2], (D, D), jnp.float32)
        wo = 0.05 * jax.random.normal(ks[3], (D, D), jnp.float32)
        # NOTE: synthetic Gaussians; real nn.Linear checkpoints would need the
        # (out_features, in_features) transpose before being used here.
        # Fold the 1/sqrt(Dh) attention scale into Wq.
        wqkv = jnp.concatenate([wq / math.sqrt(Dh), wk, wv], axis=1)       # (D, 3D)
        per_layer.append(dict(
            wqkv=wqkv.astype(jnp.bfloat16),
            wo=wo.astype(jnp.bfloat16),
            bo=0.01 * jax.random.normal(ks[4], (1, D), jnp.float32),
            g1=jnp.ones((1, D), jnp.float32),
            bt1=jnp.zeros((1, D), jnp.float32),
            w1=(0.05 * jax.random.normal(ks[5], (D, F), jnp.float32)).astype(jnp.bfloat16),
            b1=0.01 * jax.random.normal(ks[6], (1, F), jnp.float32),
            w2=(0.05 * jax.random.normal(ks[7], (F, D), jnp.float32)).astype(jnp.bfloat16),
            b2=jnp.zeros((1, D), jnp.float32),
            g2=jnp.ones((1, D), jnp.float32),
            bt2=jnp.zeros((1, D), jnp.float32),
        ))

    stacked = {}
    if per_layer:
        for name in per_layer[0]:
            stacked[name] = jnp.stack([p[name] for p in per_layer], axis=0)
    return emb_table, stacked


def make_positional_encoding(seq_len, embed_dim):
    pos = jnp.arange(seq_len, dtype=jnp.float32)[:, None]            # (S, 1)
    even_cols = jnp.arange(0, embed_dim, 2, dtype=jnp.float32)       # (D/2,)
    angles = pos / jnp.power(10000.0, even_cols / embed_dim)         # (S, D/2)
    pe = jnp.zeros((seq_len, embed_dim), jnp.float32)
    pe = pe.at[:, 0::2].set(jnp.sin(angles))
    pe = pe.at[:, 1::2].set(jnp.cos(angles))
    return pe


# ---------------------------------------------------------------------------
# full TransformerEncoder forward
# ---------------------------------------------------------------------------
def transformer_encoder(token_ids, emb_table, pe, params, n_heads):
    # Embedding lookup (data-dependent gather) kept as JAX glue.
    embed = jnp.take(emb_table, token_ids, axis=0)                   # (B, S, D) f32
    if not params:                                                   # degenerate case
        return embed * math.sqrt(embed.shape[-1]) + pe
    return encoder_stack(embed, pe, params, n_heads)
    # TODO(synk): attention `mask` path not exercised (reference forward uses mask=None).


if __name__ == "__main__":
    # small, module-consistent shapes
    batch = 2
    seq_len = 8
    vocab_size = 32
    embed_dim = 32
    num_layers = 2
    expansion_factor = 4
    n_heads = 8

    root = jax.random.PRNGKey(0)
    k_params, k_ids = jax.random.split(root)

    emb_table, params = make_params(
        k_params, vocab_size, embed_dim, num_layers, expansion_factor, n_heads
    )
    pe = make_positional_encoding(seq_len, embed_dim)

    token_ids = jax.random.randint(k_ids, (batch, seq_len), 0, vocab_size, dtype=jnp.int32)

    out = transformer_encoder(token_ids, emb_table, pe, params, n_heads)
    out = jax.block_until_ready(out)

    assert out.shape == (batch, seq_len, embed_dim)
    assert jnp.all(jnp.isfinite(out))
    print("KERNEL_OK")
</pallas_src>

<mosaic_0001>
module attributes {stable_mosaic.version = 11 : i64} {
  func.func @encoder_stack_kernel(%arg0: i32, %arg1: memref<1x8x32xf32, #tpu.memory_space<vmem>>, %arg2: memref<8x32xf32, #tpu.memory_space<vmem>>, %arg3: memref<2x32x96xbf16, #tpu.memory_space<vmem>>, %arg4: memref<2x32x32xbf16, #tpu.memory_space<vmem>>, %arg5: memref<2x1x32xf32, #tpu.memory_space<vmem>>, %arg6: memref<2x1x32xf32, #tpu.memory_space<vmem>>, %arg7: memref<2x1x32xf32, #tpu.memory_space<vmem>>, %arg8: memref<2x32x128xbf16, #tpu.memory_space<vmem>>, %arg9: memref<2x1x128xf32, #tpu.memory_space<vmem>>, %arg10: memref<2x128x32xbf16, #tpu.memory_space<vmem>>, %arg11: memref<2x1x32xf32, #tpu.memory_space<vmem>>, %arg12: memref<2x1x32xf32, #tpu.memory_space<vmem>>, %arg13: memref<2x1x32xf32, #tpu.memory_space<vmem>>, %arg14: memref<1x8x32xf32, #tpu.memory_space<vmem>>, %arg15: memref<8x32xf32, #tpu.memory_space<vmem>>) attributes {dimension_semantics = [#tpu.dimension_semantics<parallel>], iteration_bounds = array<i64: 2>, scalar_prefetch = 0 : i64, scratch_operands = 1 : i64, tpu.core_type = #tpu.core_type<tc>, window_params = [{transform_indices = @transform_0, window_bounds = array<i64: 1, 8, 32>}, {pipeline_mode = #tpu.pipeline_mode<synchronous>, transform_indices = @transform_1, window_bounds = array<i64: 8, 32>}, {pipeline_mode = #tpu.pipeline_mode<synchronous>, transform_indices = @transform_2, window_bounds = array<i64: 2, 32, 96>}, {pipeline_mode = #tpu.pipeline_mode<synchronous>, transform_indices = @transform_3, window_bounds = array<i64: 2, 32, 32>}, {pipeline_mode = #tpu.pipeline_mode<synchronous>, transform_indices = @transform_4, window_bounds = array<i64: 2, 1, 32>}, {pipeline_mode = #tpu.pipeline_mode<synchronous>, transform_indices = @transform_5, window_bounds = array<i64: 2, 1, 32>}, {pipeline_mode = #tpu.pipeline_mode<synchronous>, transform_indices = @transform_6, window_bounds = array<i64: 2, 1, 32>}, {pipeline_mode = #tpu.pipeline_mode<synchronous>, transform_indices = @transform_7, window_bounds = array<i64: 2, 32, 128>}, {pipeline_mode = #tpu.pipeline_mode<synchronous>, transform_indices = @transform_8, window_bounds = array<i64: 2, 1, 128>}, {pipeline_mode = #tpu.pipeline_mode<synchronous>, transform_indices = @transform_9, window_bounds = array<i64: 2, 128, 32>}, {pipeline_mode = #tpu.pipeline_mode<synchronous>, transform_indices = @transform_10, window_bounds = array<i64: 2, 1, 32>}, {pipeline_mode = #tpu.pipeline_mode<synchronous>, transform_indices = @transform_11, window_bounds = array<i64: 2, 1, 32>}, {pipeline_mode = #tpu.pipeline_mode<synchronous>, transform_indices = @transform_12, window_bounds = array<i64: 2, 1, 32>}, {transform_indices = @transform_13, window_bounds = array<i64: 1, 8, 32>}]} {
    %c0 = arith.constant 0 : index
    %c0_0 = arith.constant 0 : index
    %c0_1 = arith.constant 0 : index
    %0 = vector.load %arg1[%c0, %c0_0, %c0_1] : memref<1x8x32xf32, #tpu.memory_space<vmem>>, vector<1x8x32xf32>
    %1 = vector.shape_cast %0 : vector<1x8x32xf32> to vector<8x32xf32>
    %cst = arith.constant 5.65685415 : f32
    %2 = vector.broadcast %cst : f32 to vector<8x32xf32>
    %3 = arith.mulf %1, %2 : vector<8x32xf32>
    %c0_2 = arith.constant 0 : index
    %c0_3 = arith.constant 0 : index
    %4 = vector.load %arg2[%c0_2, %c0_3] : memref<8x32xf32, #tpu.memory_space<vmem>>, vector<8x32xf32>
    %5 = arith.addf %3, %4 : vector<8x32xf32>
    %6 = arith.truncf %5 : vector<8x32xf32> to vector<8x32xbf16>
    %c0_4 = arith.constant 0 : index
    %c0_5 = arith.constant 0 : index
    %c0_6 = arith.constant 0 : index
    %7 = vector.load %arg3[%c0_4, %c0_5, %c0_6] : memref<2x32x96xbf16, #tpu.memory_space<vmem>>, vector<1x32x96xbf16>
    %8 = vector.shape_cast %7 : vector<1x32x96xbf16> to vector<32x96xbf16>
    %cst_7 = arith.constant dense<0.000000e+00> : vector<8x96xf32>
    %9 = tpu.matmul %6, %8, %cst_7 {dimension_numbers = #tpu.dot_dimension_numbers<[1], [0], [0], [1], [0, 0, 1, 1], [], []>} : vector<8x32xbf16>, vector<32x96xbf16>, vector<8x96xf32> -> vector<8x96xf32>
    %10 = arith.truncf %9 : vector<8x96xf32> to vector<8x96xbf16>
    %11 = vector.extract_strided_slice %10 {offsets = [0, 0], sizes = [8, 4], strides = [1, 1]} : vector<8x96xbf16> to vector<8x4xbf16>
    %12 = vector.extract_strided_slice %10 {offsets = [0, 32], sizes = [8, 4], strides = [1, 1]} : vector<8x96xbf16> to vector<8x4xbf16>
    %13 = vector.extract_strided_slice %10 {offsets = [0, 64], sizes = [8, 4], strides = [1, 1]} : vector<8x96xbf16> to vector<8x4xbf16>
    %cst_8 = arith.constant dense<0.000000e+00> : vector<8x8xf32>
    %14 = tpu.matmul %11, %12, %cst_8 {dimension_numbers = #tpu.dot_dimension_numbers<[1], [1], [0], [0], [0, 0, 1, 0], [], []>} : vector<8x4xbf16>, vector<8x4xbf16>, vector<8x8xf32> -> vector<8x8xf32>
    %cst_9 = arith.constant dense<0xFF800000> : vector<8xf32>
    %15 = vector.multi_reduction <maximumf>, %14, %cst_9 [1] : vector<8x8xf32> to vector<8xf32>
    %16 = vector.shape_cast %15 : vector<8xf32> to vector<8x1xf32>
    %17 = vector.broadcast %16 : vector<8x1xf32> to vector<8x8xf32>
    %18 = arith.subf %14, %17 : vector<8x8xf32>
    %19 = math.exp %18 : vector<8x8xf32>
    %cst_10 = arith.constant dense<0.000000e+00> : vector<8xf32>
    %20 = vector.multi_reduction <add>, %19, %cst_10 [1] : vector<8x8xf32> to vector<8xf32>
    %21 = vector.shape_cast %20 : vector<8xf32> to vector<8x1xf32>
    %22 = tpu.reciprocal %21 {approx = true} : vector<8x1xf32> -> vector<8x1xf32>
    %23 = vector.broadcast %22 : vector<8x1xf32> to vector<8x8xf32>
    %24 = arith.mulf %19, %23 : vector<8x8xf32>
    %25 = arith.truncf %24 : vector<8x8xf32> to vector<8x8xbf16>
    %cst_11 = arith.constant dense<0.000000e+00> : vector<8x4xf32>
    %26 = tpu.matmul %25, %13, %cst_11 {dimension_numbers = #tpu.dot_dimension_numbers<[1], [0], [0], [1], [0, 0, 1, 1], [], []>} : vector<8x8xbf16>, vector<8x4xbf16>, vector<8x4xf32> -> vector<8x4xf32>
    %c0_12 = arith.constant 0 : index
    %c0_13 = arith.constant 0 : index
    %27 = vector.load %arg15[%c0_12, %c0_13] : memref<8x32xf32, #tpu.memory_space<vmem>>, vector<8x4xf32>
    tpu.vector_store %arg15[%c0_12, %c0_13], %26 {strides = array<i32>} : memref<8x32xf32, #tpu.memory_space<vmem>>, vector<8x4xf32>,
    %28 = vector.extract_strided_slice %10 {offsets = [0, 4], sizes = [8, 4], strides = [1, 1]} : vector<8x96xbf16> to vector<8x4xbf16>
    %29 = vector.extract_strided_slice %10 {offsets = [0, 36], sizes = [8, 4], strides = [1, 1]} : vector<8x96xbf16> to vector<8x4xbf16>
    %30 = vector.extract_strided_slice %10 {offsets = [0, 68], sizes = [8, 4], strides = [1, 1]} : vector<8x96xbf16> to vector<8x4xbf16>
    %cst_14 = arith.constant dense<0.000000e+00> : vector<8x8xf32>
    %31 = tpu.matmul %28, %29, %cst_14 {dimension_numbers = #tpu.dot_dimension_numbers<[1], [1], [0], [0], [0, 0, 1, 0], [], []>} : vector<8x4xbf16>, vector<8x4xbf16>, vector<8x8xf32> -> vector<8x8xf32>
    %cst_15 = arith.constant dense<0xFF800000> : vector<8xf32>
    %32 = vector.multi_reduction <maximumf>, %31, %cst_15 [1] : vector<8x8xf32> to vector<8xf32>
    %33 = vector.shape_cast %32 : vector<8xf32> to vector<8x1xf32>
    %34 = vector.broadcast %33 : vector<8x1xf32> to vector<8x8xf32>
    %35 = arith.subf %31, %34 : vector<8x8xf32>
    %36 = math.exp %35 : vector<8x8xf32>
    %cst_16 = arith.constant dense<0.000000e+00> : vector<8xf32>
    %37 = vector.multi_reduction <add>, %36, %cst_16 [1] : vector<8x8xf32> to vector<8xf32>
    %38 = vector.shape_cast %37 : vector<8xf32> to vector<8x1xf32>
    %39 = tpu.reciprocal %38 {approx = true} : vector<8x1xf32> -> vector<8x1xf32>
    %40 = vector.broadcast %39 : vector<8x1xf32> to vector<8x8xf32>
    %41 = arith.mulf %36, %40 : vector<8x8xf32>
    %42 = arith.truncf %41 : vector<8x8xf32> to vector<8x8xbf16>
    %cst_17 = arith.constant dense<0.000000e+00> : vector<8x4xf32>
    %43 = tpu.matmul %42, %30, %cst_17 {dimension_numbers = #tpu.dot_dimension_numbers<[1], [0], [0], [1], [0, 0, 1, 1], [], []>} : vector<8x8xbf16>, vector<8x4xbf16>, vector<8x4xf32> -> vector<8x4xf32>
    %c0_18 = arith.constant 0 : index
    %c4 = arith.constant 4 : index
    %44 = vector.load %arg15[%c0_18, %c4] : memref<8x32xf32, #tpu.memory_space<vmem>>, vector<8x4xf32>
    tpu.vector_store %arg15[%c0_18, %c4], %43 {strides = array<i32>} : memref<8x32xf32, #tpu.memory_space<vmem>>, vector<8x4xf32>,
    %45 = vector.extract_strided_slice %10 {offsets = [0, 8], sizes = [8, 4], strides = [1, 1]} : vector<8x96xbf16> to vector<8x4xbf16>
    %46 = vector.extract_strided_slice %10 {offsets = [0, 40], sizes = [8, 4], strides = [1, 1]} : vector<8x96xbf16> to vector<8x4xbf16>
    %47 = vector.extract_strided_slice %10 {offsets = [0, 72], sizes = [8, 4], strides = [1, 1]} : vector<8x96xbf16> to vector<8x4xbf16>
    %cst_19 = arith.constant dense<0.000000e+00> : vector<8x8xf32>
    %48 = tpu.matmul %45, %46, %cst_19 {dimension_numbers = #tpu.dot_dimension_numbers<[1], [1], [0], [0], [0, 0, 1, 0], [], []>} : vector<8x4xbf16>, vector<8x4xbf16>, vector<8x8xf32> -> vector<8x8xf32>
    %cst_20 = arith.constant dense<0xFF800000> : vector<8xf32>
    %49 = vector.multi_reduction <maximumf>, %48, %cst_20 [1] : vector<8x8xf32> to vector<8xf32>
    %50 = vector.shape_cast %49 : vector<8xf32> to vector<8x1xf32>
    %51 = vector.broadcast %50 : vector<8x1xf32> to vector<8x8xf32>
    %52 = arith.subf %48, %51 : vector<8x8xf32>
    %53 = math.exp %52 : vector<8x8xf32>
    %cst_21 = arith.constant dense<0.000000e+00> : vector<8xf32>
    %54 = vector.multi_reduction <add>, %53, %cst_21 [1] : vector<8x8xf32> to vector<8xf32>
    %55 = vector.shape_cast %54 : vector<8xf32> to vector<8x1xf32>
    %56 = tpu.reciprocal %55 {approx = true} : vector<8x1xf32> -> vector<8x1xf32>
    %57 = vector.broadcast %56 : vector<8x1xf32> to vector<8x8xf32>
    %58 = arith.mulf %53, %57 : vector<8x8xf32>
    %59 = arith.truncf %58 : vector<8x8xf32> to vector<8x8xbf16>
    %cst_22 = arith.constant dense<0.000000e+00> : vector<8x4xf32>
    %60 = tpu.matmul %59, %47, %cst_22 {dimension_numbers = #tpu.dot_dimension_numbers<[1], [0], [0], [1], [0, 0, 1, 1], [], []>} : vector<8x8xbf16>, vector<8x4xbf16>, vector<8x4xf32> -> vector<8x4xf32>
    %c0_23 = arith.constant 0 : index
    %c8 = arith.constant 8 : index
    %61 = vector.load %arg15[%c0_23, %c8] : memref<8x32xf32, #tpu.memory_space<vmem>>, vector<8x4xf32>
    tpu.vector_store %arg15[%c0_23, %c8], %60 {strides = array<i32>} : memref<8x32xf32, #tpu.memory_space<vmem>>, vector<8x4xf32>,
    %62 = vector.extract_strided_slice %10 {offsets = [0, 12], sizes = [8, 4], strides = [1, 1]} : vector<8x96xbf16> to vector<8x4xbf16>
    %63 = vector.extract_strided_slice %10 {offsets = [0, 44], sizes = [8, 4], strides = [1, 1]} : vector<8x96xbf16> to vector<8x4xbf16>
    %64 = vector.extract_strided_slice %10 {offsets = [0, 76], sizes = [8, 4], strides = [1, 1]} : vector<8x96xbf16> to vector<8x4xbf16>
    %cst_24 = arith.constant dense<0.000000e+00> : vector<8x8xf32>
    %65 = tpu.matmul %62, %63, %cst_24 {dimension_numbers = #tpu.dot_dimension_numbers<[1], [1], [0], [0], [0, 0, 1, 0], [], []>} : vector<8x4xbf16>, vector<8x4xbf16>, vector<8x8xf32> -> vector<8x8xf32>
    %cst_25 = arith.constant dense<0xFF800000> : vector<8xf32>
    %66 = vector.multi_reduction <maximumf>, %65, %cst_25 [1] : vector<8x8xf32> to vector<8xf32>
    %67 = vector.shape_cast %66 : vector<8xf32> to vector<8x1xf32>
    %68 = vector.broadcast %67 : vector<8x1xf32> to vector<8x8xf32>
    %69 = arith.subf %65, %68 : vector<8x8xf32>
    %70 = math.exp %69 : vector<8x8xf32>
    %cst_26 = arith.constant dense<0.000000e+00> : vector<8xf32>
    %71 = vector.multi_reduction <add>, %70, %cst_26 [1] : vector<8x8xf32> to vector<8xf32>
    %72 = vector.shape_cast %71 : vector<8xf32> to vector<8x1xf32>
    %73 = tpu.reciprocal %72 {approx = true} : vector<8x1xf32> -> vector<8x1xf32>
    %74 = vector.broadcast %73 : vector<8x1xf32> to vector<8x8xf32>
    %75 = arith.mulf %70, %74 : vector<8x8xf32>
    %76 = arith.truncf %75 : vector<8x8xf32> to vector<8x8xbf16>
    %cst_27 = arith.constant dense<0.000000e+00> : vector<8x4xf32>
    %77 = tpu.matmul %76, %64, %cst_27 {dimension_numbers = #tpu.dot_dimension_numbers<[1], [0], [0], [1], [0, 0, 1, 1], [], []>} : vector<8x8xbf16>, vector<8x4xbf16>, vector<8x4xf32> -> vector<8x4xf32>
    %c0_28 = arith.constant 0 : index
    %c12 = arith.constant 12 : index
    %78 = vector.load %arg15[%c0_28, %c12] : memref<8x32xf32, #tpu.memory_space<vmem>>, vector<8x4xf32>
    tpu.vector_store %arg15[%c0_28, %c12], %77 {strides = array<i32>} : memref<8x32xf32, #tpu.memory_space<vmem>>, vector<8x4xf32>,
    %79 = vector.extract_strided_slice %10 {offsets = [0, 16], sizes = [8, 4], strides = [1, 1]} : vector<8x96xbf16> to vector<8x4xbf16>
    %80 = vector.extract_strided_slice %10 {offsets = [0, 48], sizes = [8, 4], strides = [1, 1]} : vector<8x96xbf16> to vector<8x4xbf16>
    %81 = vector.extract_strided_slice %10 {offsets = [0, 80], sizes = [8, 4], strides = [1, 1]} : vector<8x96xbf16> to vector<8x4xbf16>
    %cst_29 = arith.constant dense<0.000000e+00> : vector<8x8xf32>
    %82 = tpu.matmul %79, %80, %cst_29 {dimension_numbers = #tpu.dot_dimension_numbers<[1], [1], [0], [0], [0, 0, 1, 0], [], []>} : vector<8x4xbf16>, vector<8x4xbf16>, vector<8x8xf32> -> vector<8x8xf32>
    %cst_30 = arith.constant dense<0xFF800000> : vector<8xf32>
    %83 = vector.multi_reduction <maximumf>, %82, %cst_30 [1] : vector<8x8xf32> to vector<8xf32>
    %84 = vector.shape_cast %83 : vector<8xf32> to vector<8x1xf32>
    %85 = vector.broadcast %84 : vector<8x1xf32> to vector<8x8xf32>
    %86 = arith.subf %82, %85 : vector<8x8xf32>
    %87 = math.exp %86 : vector<8x8xf32>
    %cst_31 = arith.constant dense<0.000000e+00> : vector<8xf32>
    %88 = vector.multi_reduction <add>, %87, %cst_31 [1] : vector<8x8xf32> to vector<8xf32>
    %89 = vector.shape_cast %88 : vector<8xf32> to vector<8x1xf32>
    %90 = tpu.reciprocal %89 {approx = true} : vector<8x1xf32> -> vector<8x1xf32>
    %91 = vector.broadcast %90 : vector<8x1xf32> to vector<8x8xf32>
    %92 = arith.mulf %87, %91 : vector<8x8xf32>
    %93 = arith.truncf %92 : vector<8x8xf32> to vector<8x8xbf16>
    %cst_32 = arith.constant dense<0.000000e+00> : vector<8x4xf32>
    %94 = tpu.matmul %93, %81, %cst_32 {dimension_numbers = #tpu.dot_dimension_numbers<[1], [0], [0], [1], [0, 0, 1, 1], [], []>} : vector<8x8xbf16>, vector<8x4xbf16>, vector<8x4xf32> -> vector<8x4xf32>
    %c0_33 = arith.constant 0 : index
    %c16 = arith.constant 16 : index
    %95 = vector.load %arg15[%c0_33, %c16] : memref<8x32xf32, #tpu.memory_space<vmem>>, vector<8x4xf32>
    tpu.vector_store %arg15[%c0_33, %c16], %94 {strides = array<i32>} : memref<8x32xf32, #tpu.memory_space<vmem>>, vector<8x4xf32>,
    %96 = vector.extract_strided_slice %10 {offsets = [0, 20], sizes = [8, 4], strides = [1, 1]} : vector<8x96xbf16> to vector<8x4xbf16>
    %97 = vector.extract_strided_slice %10 {offsets = [0, 52], sizes = [8, 4], strides = [1, 1]} : vector<8x96xbf16> to vector<8x4xbf16>
    %98 = vector.extract_strided_slice %10 {offsets = [0, 84], sizes = [8, 4], strides = [1, 1]} : vector<8x96xbf16> to vector<8x4xbf16>
    %cst_34 = arith.constant dense<0.000000e+00> : vector<8x8xf32>
    %99 = tpu.matmul %96, %97, %cst_34 {dimension_numbers = #tpu.dot_dimension_numbers<[1], [1], [0], [0], [0, 0, 1, 0], [], []>} : vector<8x4xbf16>, vector<8x4xbf16>, vector<8x8xf32> -> vector<8x8xf32>
    %cst_35 = arith.constant dense<0xFF800000> : vector<8xf32>
    %100 = vector.multi_reduction <maximumf>, %99, %cst_35 [1] : vector<8x8xf32> to vector<8xf32>
    %101 = vector.shape_cast %100 : vector<8xf32> to vector<8x1xf32>
    %102 = vector.broadcast %101 : vector<8x1xf32> to vector<8x8xf32>
    %103 = arith.subf %99, %102 : vector<8x8xf32>
    %104 = math.exp %103 : vector<8x8xf32>
    %cst_36 = arith.constant dense<0.000000e+00> : vector<8xf32>
    %105 = vector.multi_reduction <add>, %104, %cst_36 [1] : vector<8x8xf32> to vector<8xf32>
    %106 = vector.shape_cast %105 : vector<8xf32> to vector<8x1xf32>
    %107 = tpu.reciprocal %106 {approx = true} : vector<8x1xf32> -> vector<8x1xf32>
    %108 = vector.broadcast %107 : vector<8x1xf32> to vector<8x8xf32>
    %109 = arith.mulf %104, %108 : vector<8x8xf32>
    %110 = arith.truncf %109 : vector<8x8xf32> to vector<8x8xbf16>
    %cst_37 = arith.constant dense<0.000000e+00> : vector<8x4xf32>
    %111 = tpu.matmul %110, %98, %cst_37 {dimension_numbers = #tpu.dot_dimension_numbers<[1], [0], [0], [1], [0, 0, 1, 1], [], []>} : vector<8x8xbf16>, vector<8x4xbf16>, vector<8x4xf32> -> vector<8x4xf32>
    %c0_38 = arith.constant 0 : index
    %c20 = arith.constant 20 : index
    %112 = vector.load %arg15[%c0_38, %c20] : memref<8x32xf32, #tpu.memory_space<vmem>>, vector<8x4xf32>
    tpu.vector_store %arg15[%c0_38, %c20], %111 {strides = array<i32>} : memref<8x32xf32, #tpu.memory_space<vmem>>, vector<8x4xf32>,
    %113 = vector.extract_strided_slice %10 {offsets = [0, 24], sizes = [8, 4], strides = [1, 1]} : vector<8x96xbf16> to vector<8x4xbf16>
    %114 = vector.extract_strided_slice %10 {offsets = [0, 56], sizes = [8, 4], strides = [1, 1]} : vector<8x96xbf16> to vector<8x4xbf16>
    %115 = vector.extract_strided_slice %10 {offsets = [0, 88], sizes = [8, 4], strides = [1, 1]} : vector<8x96xbf16> to vector<8x4xbf16>
    %cst_39 = arith.constant dense<0.000000e+00> : vector<8x8xf32>
    %116 = tpu.matmul %113, %114, %cst_39 {dimension_numbers = #tpu.dot_dimension_numbers<[1], [1], [0], [0], [0, 0, 1, 0], [], []>} : vector<8x4xbf16>, vector<8x4xbf16>, vector<8x8xf32> -> vector<8x8xf32>
    %cst_40 = arith.constant dense<0xFF800000> : vector<8xf32>
    %117 = vector.multi_reduction <maximumf>, %116, %cst_40 [1] : vector<8x8xf32> to vector<8xf32>
    %118 = vector.shape_cast %117 : vector<8xf32> to vector<8x1xf32>
    %119 = vector.broadcast %118 : vector<8x1xf32> to vector<8x8xf32>
    %120 = arith.subf %116, %119 : vector<8x8xf32>
    %121 = math.exp %120 : vector<8x8xf32>
    %cst_41 = arith.constant dense<0.000000e+00> : vector<8xf32>
    %122 = vector.multi_reduction <add>, %121, %cst_41 [1] : vector<8x8xf32> to vector<8xf32>
    %123 = vector.shape_cast %122 : vector<8xf32> to vector<8x1xf32>
    %124 = tpu.reciprocal %123 {approx = true} : vector<8x1xf32> -> vector<8x1xf32>
    %125 = vector.broadcast %124 : vector<8x1xf32> to vector<8x8xf32>
    %126 = arith.mulf %121, %125 : vector<8x8xf32>
    %127 = arith.truncf %126 : vector<8x8xf32> to vector<8x8xbf16>
    %cst_42 = arith.constant dense<0.000000e+00> : vector<8x4xf32>
    %128 = tpu.matmul %127, %115, %cst_42 {dimension_numbers = #tpu.dot_dimension_numbers<[1], [0], [0], [1], [0, 0, 1, 1], [], []>} : vector<8x8xbf16>, vector<8x4xbf16>, vector<8x4xf32> -> vector<8x4xf32>
    %c0_43 = arith.constant 0 : index
    %c24 = arith.constant 24 : index
    %129 = vector.load %arg15[%c0_43, %c24] : memref<8x32xf32, #tpu.memory_space<vmem>>, vector<8x4xf32>
    tpu.vector_store %arg15[%c0_43, %c24], %128 {strides = array<i32>} : memref<8x32xf32, #tpu.memory_space<vmem>>, vector<8x4xf32>,
    %130 = vector.extract_strided_slice %10 {offsets = [0, 28], sizes = [8, 4], strides = [1, 1]} : vector<8x96xbf16> to vector<8x4xbf16>
    %131 = vector.extract_strided_slice %10 {offsets = [0, 60], sizes = [8, 4], strides = [1, 1]} : vector<8x96xbf16> to vector<8x4xbf16>
    %132 = vector.extract_strided_slice %10 {offsets = [0, 92], sizes = [8, 4], strides = [1, 1]} : vector<8x96xbf16> to vector<8x4xbf16>
    %cst_44 = arith.constant dense<0.000000e+00> : vector<8x8xf32>
    %133 = tpu.matmul %130, %131, %cst_44 {dimension_numbers = #tpu.dot_dimension_numbers<[1], [1], [0], [0], [0, 0, 1, 0], [], []>} : vector<8x4xbf16>, vector<8x4xbf16>, vector<8x8xf32> -> vector<8x8xf32>
    %cst_45 = arith.constant dense<0xFF800000> : vector<8xf32>
    %134 = vector.multi_reduction <maximumf>, %133, %cst_45 [1] : vector<8x8xf32> to vector<8xf32>
    %135 = vector.shape_cast %134 : vector<8xf32> to vector<8x1xf32>
    %136 = vector.broadcast %135 : vector<8x1xf32> to vector<8x8xf32>
    %137 = arith.subf %133, %136 : vector<8x8xf32>
    %138 = math.exp %137 : vector<8x8xf32>
    %cst_46 = arith.constant dense<0.000000e+00> : vector<8xf32>
    %139 = vector.multi_reduction <add>, %138, %cst_46 [1] : vector<8x8xf32> to vector<8xf32>
    %140 = vector.shape_cast %139 : vector<8xf32> to vector<8x1xf32>
    %141 = tpu.reciprocal %140 {approx = true} : vector<8x1xf32> -> vector<8x1xf32>
    %142 = vector.broadcast %141 : vector<8x1xf32> to vector<8x8xf32>
    %143 = arith.mulf %138, %142 : vector<8x8xf32>
    %144 = arith.truncf %143 : vector<8x8xf32> to vector<8x8xbf16>
    %cst_47 = arith.constant dense<0.000000e+00> : vector<8x4xf32>
    %145 = tpu.matmul %144, %132, %cst_47 {dimension_numbers = #tpu.dot_dimension_numbers<[1], [0], [0], [1], [0, 0, 1, 1], [], []>} : vector<8x8xbf16>, vector<8x4xbf16>, vector<8x4xf32> -> vector<8x4xf32>
    %c0_48 = arith.constant 0 : index
    %c28 = arith.constant 28 : index
    %146 = vector.load %arg15[%c0_48, %c28] : memref<8x32xf32, #tpu.memory_space<vmem>>, vector<8x4xf32>
    tpu.vector_store %arg15[%c0_48, %c28], %145 {strides = array<i32>} : memref<8x32xf32, #tpu.memory_space<vmem>>, vector<8x4xf32>,
    %c0_49 = arith.constant 0 : index
    %c0_50 = arith.constant 0 : index
    %147 = vector.load %arg15[%c0_49, %c0_50] : memref<8x32xf32, #tpu.memory_space<vmem>>, vector<8x32xf32>
    %148 = arith.truncf %147 : vector<8x32xf32> to vector<8x32xbf16>
    %c0_51 = arith.constant 0 : index
    %c0_52 = arith.constant 0 : index
    %c0_53 = arith.constant 0 : index
    %149 = vector.load %arg4[%c0_51, %c0_52, %c0_53] : memref<2x32x32xbf16, #tpu.memory_space<vmem>>, vector<1x32x32xbf16>
    %150 = vector.shape_cast %149 : vector<1x32x32xbf16> to vector<32x32xbf16>
    %cst_54 = arith.constant dense<0.000000e+00> : vector<8x32xf32>
    %151 = tpu.matmul %148, %150, %cst_54 {dimension_numbers = #tpu.dot_dimension_numbers<[1], [0], [0], [1], [0, 0, 1, 1], [], []>} : vector<8x32xbf16>, vector<32x32xbf16>, vector<8x32xf32> -> vector<8x32xf32>
    %c0_55 = arith.constant 0 : index
    %c0_56 = arith.constant 0 : index
    %c0_57 = arith.constant 0 : index
    %152 = vector.load %arg5[%c0_55, %c0_56, %c0_57] : memref<2x1x32xf32, #tpu.memory_space<vmem>>, vector<1x1x32xf32>
    %153 = vector.shape_cast %152 : vector<1x1x32xf32> to vector<1x32xf32>
    %154 = vector.broadcast %153 : vector<1x32xf32> to vector<8x32xf32>
    %155 = arith.addf %151, %154 : vector<8x32xf32>
    %156 = arith.addf %155, %155 : vector<8x32xf32>
    %c0_58 = arith.constant 0 : index
    %c0_59 = arith.constant 0 : index
    %c0_60 = arith.constant 0 : index
    %157 = vector.load %arg6[%c0_58, %c0_59, %c0_60] : memref<2x1x32xf32, #tpu.memory_space<vmem>>, vector<1x1x32xf32>
    %158 = vector.shape_cast %157 : vector<1x1x32xf32> to vector<1x32xf32>
    %c0_61 = arith.constant 0 : index
    %c0_62 = arith.constant 0 : index
    %c0_63 = arith.constant 0 : index
    %159 = vector.load %arg7[%c0_61, %c0_62, %c0_63] : memref<2x1x32xf32, #tpu.memory_space<vmem>>, vector<1x1x32xf32>
    %160 = vector.shape_cast %159 : vector<1x1x32xf32> to vector<1x32xf32>
    %cst_64 = arith.constant dense<0.000000e+00> : vector<8xf32>
    %161 = vector.multi_reduction <add>, %156, %cst_64 [1] : vector<8x32xf32> to vector<8xf32>
    %162 = vector.shape_cast %161 : vector<8xf32> to vector<8x1xf32>
    %cst_65 = arith.constant 3.200000e+01 : f32
    %163 = vector.broadcast %cst_65 : f32 to vector<8x1xf32>
    %164 = arith.divf %162, %163 : vector<8x1xf32>
    %165 = arith.mulf %156, %156 : vector<8x32xf32>
    %cst_66 = arith.constant dense<0.000000e+00> : vector<8xf32>
    %166 = vector.multi_reduction <add>, %165, %cst_66 [1] : vector<8x32xf32> to vector<8xf32>
    %167 = vector.shape_cast %166 : vector<8xf32> to vector<8x1xf32>
    %cst_67 = arith.constant 3.200000e+01 : f32
    %168 = vector.broadcast %cst_67 : f32 to vector<8x1xf32>
    %169 = arith.divf %167, %168 : vector<8x1xf32>
    %170 = arith.mulf %164, %164 : vector<8x1xf32>
    %171 = arith.subf %169, %170 : vector<8x1xf32>
    %172 = vector.broadcast %164 : vector<8x1xf32> to vector<8x32xf32>
    %173 = arith.subf %156, %172 : vector<8x32xf32>
    %cst_68 = arith.constant 9.99999974E-6 : f32
    %174 = vector.broadcast %cst_68 : f32 to vector<8x1xf32>
    %175 = arith.addf %171, %174 : vector<8x1xf32>
    %176 = math.rsqrt %175 : vector<8x1xf32>
    %177 = vector.broadcast %176 : vector<8x1xf32> to vector<8x32xf32>
    %178 = arith.mulf %173, %177 : vector<8x32xf32>
    %179 = vector.broadcast %158 : vector<1x32xf32> to vector<8x32xf32>
    %180 = arith.mulf %178, %179 : vector<8x32xf32>
    %181 = vector.broadcast %160 : vector<1x32xf32> to vector<8x32xf32>
    %182 = arith.addf %180, %181 : vector<8x32xf32>
    %183 = arith.truncf %182 : vector<8x32xf32> to vector<8x32xbf16>
    %c0_69 = arith.constant 0 : index
    %c0_70 = arith.constant 0 : index
    %c0_71 = arith.constant 0 : index
    %184 = vector.load %arg8[%c0_69, %c0_70, %c0_71] : memref<2x32x128xbf16, #tpu.memory_space<vmem>>, vector<1x32x128xbf16>
    %185 = vector.shape_cast %184 : vector<1x32x128xbf16> to vector<32x128xbf16>
    %cst_72 = arith.constant dense<0.000000e+00> : vector<8x128xf32>
    %186 = tpu.matmul %183, %185, %cst_72 {dimension_numbers = #tpu.dot_dimension_numbers<[1], [0], [0], [1], [0, 0, 1, 1], [], []>} : vector<8x32xbf16>, vector<32x128xbf16>, vector<8x128xf32> -> vector<8x128xf32>
    %c0_73 = arith.constant 0 : index
    %c0_74 = arith.constant 0 : index
    %c0_75 = arith.constant 0 : index
    %187 = vector.load %arg9[%c0_73, %c0_74, %c0_75] : memref<2x1x128xf32, #tpu.memory_space<vmem>>, vector<1x1x128xf32>
    %188 = vector.shape_cast %187 : vector<1x1x128xf32> to vector<1x128xf32>
    %189 = vector.broadcast %188 : vector<1x128xf32> to vector<8x128xf32>
    %190 = arith.addf %186, %189 : vector<8x128xf32>
    %cst_76 = arith.constant 0.000000e+00 : f32
    %191 = vector.broadcast %cst_76 : f32 to vector<8x128xf32>
    %192 = arith.maximumf %190, %191 : vector<8x128xf32>
    %193 = arith.truncf %192 : vector<8x128xf32> to vector<8x128xbf16>
    %c0_77 = arith.constant 0 : index
    %c0_78 = arith.constant 0 : index
    %c0_79 = arith.constant 0 : index
    %194 = vector.load %arg10[%c0_77, %c0_78, %c0_79] : memref<2x128x32xbf16, #tpu.memory_space<vmem>>, vector<1x128x32xbf16>
    %195 = vector.shape_cast %194 : vector<1x128x32xbf16> to vector<128x32xbf16>
    %cst_80 = arith.constant dense<0.000000e+00> : vector<8x32xf32>
    %196 = tpu.matmul %193, %195, %cst_80 {dimension_numbers = #tpu.dot_dimension_numbers<[1], [0], [0], [1], [0, 0, 1, 1], [], []>} : vector<8x128xbf16>, vector<128x32xbf16>, vector<8x32xf32> -> vector<8x32xf32>
    %c0_81 = arith.constant 0 : index
    %c0_82 = arith.constant 0 : index
    %c0_83 = arith.constant 0 : index
    %197 = vector.load %arg11[%c0_81, %c0_82, %c0_83] : memref<2x1x32xf32, #tpu.memory_space<vmem>>, vector<1x1x32xf32>
    %198 = vector.shape_cast %197 : vector<1x1x32xf32> to vector<1x32xf32>
    %199 = vector.broadcast %198 : vector<1x32xf32> to vector<8x32xf32>
    %200 = arith.addf %196, %199 : vector<8x32xf32>
    %201 = arith.addf %200, %182 : vector<8x32xf32>
    %c0_84 = arith.constant 0 : index
    %c0_85 = arith.constant 0 : index
    %c0_86 = arith.constant 0 : index
    %202 = vector.load %arg12[%c0_84, %c0_85, %c0_86] : memref<2x1x32xf32, #tpu.memory_space<vmem>>, vector<1x1x32xf32>
    %203 = vector.shape_cast %202 : vector<1x1x32xf32> to vector<1x32xf32>
    %c0_87 = arith.constant 0 : index
    %c0_88 = arith.constant 0 : index
    %c0_89 = arith.constant 0 : index
    %204 = vector.load %arg13[%c0_87, %c0_88, %c0_89] : memref<2x1x32xf32, #tpu.memory_space<vmem>>, vector<1x1x32xf32>
    %205 = vector.shape_cast %204 : vector<1x1x32xf32> to vector<1x32xf32>
    %cst_90 = arith.constant dense<0.000000e+00> : vector<8xf32>
    %206 = vector.multi_reduction <add>, %201, %cst_90 [1] : vector<8x32xf32> to vector<8xf32>
    %207 = vector.shape_cast %206 : vector<8xf32> to vector<8x1xf32>
    %cst_91 = arith.constant 3.200000e+01 : f32
    %208 = vector.broadcast %cst_91 : f32 to vector<8x1xf32>
    %209 = arith.divf %207, %208 : vector<8x1xf32>
    %210 = arith.mulf %201, %201 : vector<8x32xf32>
    %cst_92 = arith.constant dense<0.000000e+00> : vector<8xf32>
    %211 = vector.multi_reduction <add>, %210, %cst_92 [1] : vector<8x32xf32> to vector<8xf32>
    %212 = vector.shape_cast %211 : vector<8xf32> to vector<8x1xf32>
    %cst_93 = arith.constant 3.200000e+01 : f32
    %213 = vector.broadcast %cst_93 : f32 to vector<8x1xf32>
    %214 = arith.divf %212, %213 : vector<8x1xf32>
    %215 = arith.mulf %209, %209 : vector<8x1xf32>
    %216 = arith.subf %214, %215 : vector<8x1xf32>
    %217 = vector.broadcast %209 : vector<8x1xf32> to vector<8x32xf32>
    %218 = arith.subf %201, %217 : vector<8x32xf32>
    %cst_94 = arith.constant 9.99999974E-6 : f32
    %219 = vector.broadcast %cst_94 : f32 to vector<8x1xf32>
    %220 = arith.addf %216, %219 : vector<8x1xf32>
    %221 = math.rsqrt %220 : vector<8x1xf32>
    %222 = vector.broadcast %221 : vector<8x1xf32> to vector<8x32xf32>
    %223 = arith.mulf %218, %222 : vector<8x32xf32>
    %224 = vector.broadcast %203 : vector<1x32xf32> to vector<8x32xf32>
    %225 = arith.mulf %223, %224 : vector<8x32xf32>
    %226 = vector.broadcast %205 : vector<1x32xf32> to vector<8x32xf32>
    %227 = arith.addf %225, %226 : vector<8x32xf32>
    %228 = arith.truncf %227 : vector<8x32xf32> to vector<8x32xbf16>
    %c1 = arith.constant 1 : index
    %c0_95 = arith.constant 0 : index
    %c0_96 = arith.constant 0 : index
    %229 = vector.load %arg3[%c1, %c0_95, %c0_96] : memref<2x32x96xbf16, #tpu.memory_space<vmem>>, vector<1x32x96xbf16>
    %230 = vector.shape_cast %229 : vector<1x32x96xbf16> to vector<32x96xbf16>
    %cst_97 = arith.constant dense<0.000000e+00> : vector<8x96xf32>
    %231 = tpu.matmul %228, %230, %cst_97 {dimension_numbers = #tpu.dot_dimension_numbers<[1], [0], [0], [1], [0, 0, 1, 1], [], []>} : vector<8x32xbf16>, vector<32x96xbf16>, vector<8x96xf32> -> vector<8x96xf32>
    %232 = arith.truncf %231 : vector<8x96xf32> to vector<8x96xbf16>
    %233 = vector.extract_strided_slice %232 {offsets = [0, 0], sizes = [8, 4], strides = [1, 1]} : vector<8x96xbf16> to vector<8x4xbf16>
    %234 = vector.extract_strided_slice %232 {offsets = [0, 32], sizes = [8, 4], strides = [1, 1]} : vector<8x96xbf16> to vector<8x4xbf16>
    %235 = vector.extract_strided_slice %232 {offsets = [0, 64], sizes = [8, 4], strides = [1, 1]} : vector<8x96xbf16> to vector<8x4xbf16>
    %cst_98 = arith.constant dense<0.000000e+00> : vector<8x8xf32>
    %236 = tpu.matmul %233, %234, %cst_98 {dimension_numbers = #tpu.dot_dimension_numbers<[1], [1], [0], [0], [0, 0, 1, 0], [], []>} : vector<8x4xbf16>, vector<8x4xbf16>, vector<8x8xf32> -> vector<8x8xf32>
    %cst_99 = arith.constant dense<0xFF800000> : vector<8xf32>
    %237 = vector.multi_reduction <maximumf>, %236, %cst_99 [1] : vector<8x8xf32> to vector<8xf32>
    %238 = vector.shape_cast %237 : vector<8xf32> to vector<8x1xf32>
    %239 = vector.broadcast %238 : vector<8x1xf32> to vector<8x8xf32>
    %240 = arith.subf %236, %239 : vector<8x8xf32>
    %241 = math.exp %240 : vector<8x8xf32>
    %cst_100 = arith.constant dense<0.000000e+00> : vector<8xf32>
    %242 = vector.multi_reduction <add>, %241, %cst_100 [1] : vector<8x8xf32> to vector<8xf32>
    %243 = vector.shape_cast %242 : vector<8xf32> to vector<8x1xf32>
    %244 = tpu.reciprocal %243 {approx = true} : vector<8x1xf32> -> vector<8x1xf32>
    %245 = vector.broadcast %244 : vector<8x1xf32> to vector<8x8xf32>
    %246 = arith.mulf %241, %245 : vector<8x8xf32>
    %247 = arith.truncf %246 : vector<8x8xf32> to vector<8x8xbf16>
    %cst_101 = arith.constant dense<0.000000e+00> : vector<8x4xf32>
    %248 = tpu.matmul %247, %235, %cst_101 {dimension_numbers = #tpu.dot_dimension_numbers<[1], [0], [0], [1], [0, 0, 1, 1], [], []>} : vector<8x8xbf16>, vector<8x4xbf16>, vector<8x4xf32> -> vector<8x4xf32>
    %c0_102 = arith.constant 0 : index
    %c0_103 = arith.constant 0 : index
    %249 = vector.load %arg15[%c0_102, %c0_103] : memref<8x32xf32, #tpu.memory_space<vmem>>, vector<8x4xf32>
    tpu.vector_store %arg15[%c0_102, %c0_103], %248 {strides = array<i32>} : memref<8x32xf32, #tpu.memory_space<vmem>>, vector<8x4xf32>,
    %250 = vector.extract_strided_slice %232 {offsets = [0, 4], sizes = [8, 4], strides = [1, 1]} : vector<8x96xbf16> to vector<8x4xbf16>
    %251 = vector.extract_strided_slice %232 {offsets = [0, 36], sizes = [8, 4], strides = [1, 1]} : vector<8x96xbf16> to vector<8x4xbf16>
    %252 = vector.extract_strided_slice %232 {offsets = [0, 68], sizes = [8, 4], strides = [1, 1]} : vector<8x96xbf16> to vector<8x4xbf16>
    %cst_104 = arith.constant dense<0.000000e+00> : vector<8x8xf32>
    %253 = tpu.matmul %250, %251, %cst_104 {dimension_numbers = #tpu.dot_dimension_numbers<[1], [1], [0], [0], [0, 0, 1, 0], [], []>} : vector<8x4xbf16>, vector<8x4xbf16>, vector<8x8xf32> -> vector<8x8xf32>
    %cst_105 = arith.constant dense<0xFF800000> : vector<8xf32>
    %254 = vector.multi_reduction <maximumf>, %253, %cst_105 [1] : vector<8x8xf32> to vector<8xf32>
    %255 = vector.shape_cast %254 : vector<8xf32> to vector<8x1xf32>
    %256 = vector.broadcast %255 : vector<8x1xf32> to vector<8x8xf32>
    %257 = arith.subf %253, %256 : vector<8x8xf32>
    %258 = math.exp %257 : vector<8x8xf32>
    %cst_106 = arith.constant dense<0.000000e+00> : vector<8xf32>
    %259 = vector.multi_reduction <add>, %258, %cst_106 [1] : vector<8x8xf32> to vector<8xf32>
    %260 = vector.shape_cast %259 : vector<8xf32> to vector<8x1xf32>
    %261 = tpu.reciprocal %260 {approx = true} : vector<8x1xf32> -> vector<8x1xf32>
    %262 = vector.broadcast %261 : vector<8x1xf32> to vector<8x8xf32>
    %263 = arith.mulf %258, %262 : vector<8x8xf32>
    %264 = arith.truncf %263 : vector<8x8xf32> to vector<8x8xbf16>
    %cst_107 = arith.constant dense<0.000000e+00> : vector<8x4xf32>
    %265 = tpu.matmul %264, %252, %cst_107 {dimension_numbers = #tpu.dot_dimension_numbers<[1], [0], [0], [1], [0, 0, 1, 1], [], []>} : vector<8x8xbf16>, vector<8x4xbf16>, vector<8x4xf32> -> vector<8x4xf32>
    %c0_108 = arith.constant 0 : index
    %c4_109 = arith.constant 4 : index
    %266 = vector.load %arg15[%c0_108, %c4_109] : memref<8x32xf32, #tpu.memory_space<vmem>>, vector<8x4xf32>
    tpu.vector_store %arg15[%c0_108, %c4_109], %265 {strides = array<i32>} : memref<8x32xf32, #tpu.memory_space<vmem>>, vector<8x4xf32>,
    %267 = vector.extract_strided_slice %232 {offsets = [0, 8], sizes = [8, 4], strides = [1, 1]} : vector<8x96xbf16> to vector<8x4xbf16>
    %268 = vector.extract_strided_slice %232 {offsets = [0, 40], sizes = [8, 4], strides = [1, 1]} : vector<8x96xbf16> to vector<8x4xbf16>
    %269 = vector.extract_strided_slice %232 {offsets = [0, 72], sizes = [8, 4], strides = [1, 1]} : vector<8x96xbf16> to vector<8x4xbf16>
    %cst_110 = arith.constant dense<0.000000e+00> : vector<8x8xf32>
    %270 = tpu.matmul %267, %268, %cst_110 {dimension_numbers = #tpu.dot_dimension_numbers<[1], [1], [0], [0], [0, 0, 1, 0], [], []>} : vector<8x4xbf16>, vector<8x4xbf16>, vector<8x8xf32> -> vector<8x8xf32>
    %cst_111 = arith.constant dense<0xFF800000> : vector<8xf32>
    %271 = vector.multi_reduction <maximumf>, %270, %cst_111 [1] : vector<8x8xf32> to vector<8xf32>
    %272 = vector.shape_cast %271 : vector<8xf32> to vector<8x1xf32>
    %273 = vector.broadcast %272 : vector<8x1xf32> to vector<8x8xf32>
    %274 = arith.subf %270, %273 : vector<8x8xf32>
    %275 = math.exp %274 : vector<8x8xf32>
    %cst_112 = arith.constant dense<0.000000e+00> : vector<8xf32>
    %276 = vector.multi_reduction <add>, %275, %cst_112 [1] : vector<8x8xf32> to vector<8xf32>
    %277 = vector.shape_cast %276 : vector<8xf32> to vector<8x1xf32>
    %278 = tpu.reciprocal %277 {approx = true} : vector<8x1xf32> -> vector<8x1xf32>
    %279 = vector.broadcast %278 : vector<8x1xf32> to vector<8x8xf32>
    %280 = arith.mulf %275, %279 : vector<8x8xf32>
    %281 = arith.truncf %280 : vector<8x8xf32> to vector<8x8xbf16>
    %cst_113 = arith.constant dense<0.000000e+00> : vector<8x4xf32>
    %282 = tpu.matmul %281, %269, %cst_113 {dimension_numbers = #tpu.dot_dimension_numbers<[1], [0], [0], [1], [0, 0, 1, 1], [], []>} : vector<8x8xbf16>, vector<8x4xbf16>, vector<8x4xf32> -> vector<8x4xf32>
    %c0_114 = arith.constant 0 : index
    %c8_115 = arith.constant 8 : index
    %283 = vector.load %arg15[%c0_114, %c8_115] : memref<8x32xf32, #tpu.memory_space<vmem>>, vector<8x4xf32>
    tpu.vector_store %arg15[%c0_114, %c8_115], %282 {strides = array<i32>} : memref<8x32xf32, #tpu.memory_space<vmem>>, vector<8x4xf32>,
    %284 = vector.extract_strided_slice %232 {offsets = [0, 12], sizes = [8, 4], strides = [1, 1]} : vector<8x96xbf16> to vector<8x4xbf16>
    %285 = vector.extract_strided_slice %232 {offsets = [0, 44], sizes = [8, 4], strides = [1, 1]} : vector<8x96xbf16> to vector<8x4xbf16>
    %286 = vector.extract_strided_slice %232 {offsets = [0, 76], sizes = [8, 4], strides = [1, 1]} : vector<8x96xbf16> to vector<8x4xbf16>
    %cst_116 = arith.constant dense<0.000000e+00> : vector<8x8xf32>
    %287 = tpu.matmul %284, %285, %cst_116 {dimension_numbers = #tpu.dot_dimension_numbers<[1], [1], [0], [0], [0, 0, 1, 0], [], []>} : vector<8x4xbf16>, vector<8x4xbf16>, vector<8x8xf32> -> vector<8x8xf32>
    %cst_117 = arith.constant dense<0xFF800000> : vector<8xf32>
    %288 = vector.multi_reduction <maximumf>, %287, %cst_117 [1] : vector<8x8xf32> to vector<8xf32>
    %289 = vector.shape_cast %288 : vector<8xf32> to vector<8x1xf32>
    %290 = vector.broadcast %289 : vector<8x1xf32> to vector<8x8xf32>
    %291 = arith.subf %287, %290 : vector<8x8xf32>
    %292 = math.exp %291 : vector<8x8xf32>
    %cst_118 = arith.constant dense<0.000000e+00> : vector<8xf32>
    %293 = vector.multi_reduction <add>, %292, %cst_118 [1] : vector<8x8xf32> to vector<8xf32>
    %294 = vector.shape_cast %293 : vector<8xf32> to vector<8x1xf32>
    %295 = tpu.reciprocal %294 {approx = true} : vector<8x1xf32> -> vector<8x1xf32>
    %296 = vector.broadcast %295 : vector<8x1xf32> to vector<8x8xf32>
    %297 = arith.mulf %292, %296 : vector<8x8xf32>
    %298 = arith.truncf %297 : vector<8x8xf32> to vector<8x8xbf16>
    %cst_119 = arith.constant dense<0.000000e+00> : vector<8x4xf32>
    %299 = tpu.matmul %298, %286, %cst_119 {dimension_numbers = #tpu.dot_dimension_numbers<[1], [0], [0], [1], [0, 0, 1, 1], [], []>} : vector<8x8xbf16>, vector<8x4xbf16>, vector<8x4xf32> -> vector<8x4xf32>
    %c0_120 = arith.constant 0 : index
    %c12_121 = arith.constant 12 : index
    %300 = vector.load %arg15[%c0_120, %c12_121] : memref<8x32xf32, #tpu.memory_space<vmem>>, vector<8x4xf32>
    tpu.vector_store %arg15[%c0_120, %c12_121], %299 {strides = array<i32>} : memref<8x32xf32, #tpu.memory_space<vmem>>, vector<8x4xf32>,
    %301 = vector.extract_strided_slice %232 {offsets = [0, 16], sizes = [8, 4], strides = [1, 1]} : vector<8x96xbf16> to vector<8x4xbf16>
    %302 = vector.extract_strided_slice %232 {offsets = [0, 48], sizes = [8, 4], strides = [1, 1]} : vector<8x96xbf16> to vector<8x4xbf16>
    %303 = vector.extract_strided_slice %232 {offsets = [0, 80], sizes = [8, 4], strides = [1, 1]} : vector<8x96xbf16> to vector<8x4xbf16>
    %cst_122 = arith.constant dense<0.000000e+00> : vector<8x8xf32>
    %304 = tpu.matmul %301, %302, %cst_122 {dimension_numbers = #tpu.dot_dimension_numbers<[1], [1], [0], [0], [0, 0, 1, 0], [], []>} : vector<8x4xbf16>, vector<8x4xbf16>, vector<8x8xf32> -> vector<8x8xf32>
    %cst_123 = arith.constant dense<0xFF800000> : vector<8xf32>
    %305 = vector.multi_reduction <maximumf>, %304, %cst_123 [1] : vector<8x8xf32> to vector<8xf32>
    %306 = vector.shape_cast %305 : vector<8xf32> to vector<8x1xf32>
    %307 = vector.broadcast %306 : vector<8x1xf32> to vector<8x8xf32>
    %308 = arith.subf %304, %307 : vector<8x8xf32>
    %309 = math.exp %308 : vector<8x8xf32>
    %cst_124 = arith.constant dense<0.000000e+00> : vector<8xf32>
    %310 = vector.multi_reduction <add>, %309, %cst_124 [1] : vector<8x8xf32> to vector<8xf32>
    %311 = vector.shape_cast %310 : vector<8xf32> to vector<8x1xf32>
    %312 = tpu.reciprocal %311 {approx = true} : vector<8x1xf32> -> vector<8x1xf32>
    %313 = vector.broadcast %312 : vector<8x1xf32> to vector<8x8xf32>
    %314 = arith.mulf %309, %313 : vector<8x8xf32>
    %315 = arith.truncf %314 : vector<8x8xf32> to vector<8x8xbf16>
    %cst_125 = arith.constant dense<0.000000e+00> : vector<8x4xf32>
    %316 = tpu.matmul %315, %303, %cst_125 {dimension_numbers = #tpu.dot_dimension_numbers<[1], [0], [0], [1], [0, 0, 1, 1], [], []>} : vector<8x8xbf16>, vector<8x4xbf16>, vector<8x4xf32> -> vector<8x4xf32>
    %c0_126 = arith.constant 0 : index
    %c16_127 = arith.constant 16 : index
    %317 = vector.load %arg15[%c0_126, %c16_127] : memref<8x32xf32, #tpu.memory_space<vmem>>, vector<8x4xf32>
    tpu.vector_store %arg15[%c0_126, %c16_127], %316 {strides = array<i32>} : memref<8x32xf32, #tpu.memory_space<vmem>>, vector<8x4xf32>,
    %318 = vector.extract_strided_slice %232 {offsets = [0, 20], sizes = [8, 4], strides = [1, 1]} : vector<8x96xbf16> to vector<8x4xbf16>
    %319 = vector.extract_strided_slice %232 {offsets = [0, 52], sizes = [8, 4], strides = [1, 1]} : vector<8x96xbf16> to vector<8x4xbf16>
    %320 = vector.extract_strided_slice %232 {offsets = [0, 84], sizes = [8, 4], strides = [1, 1]} : vector<8x96xbf16> to vector<8x4xbf16>
    %cst_128 = arith.constant dense<0.000000e+00> : vector<8x8xf32>
    %321 = tpu.matmul %318, %319, %cst_128 {dimension_numbers = #tpu.dot_dimension_numbers<[1], [1], [0], [0], [0, 0, 1, 0], [], []>} : vector<8x4xbf16>, vector<8x4xbf16>, vector<8x8xf32> -> vector<8x8xf32>
    %cst_129 = arith.constant dense<0xFF800000> : vector<8xf32>
    %322 = vector.multi_reduction <maximumf>, %321, %cst_129 [1] : vector<8x8xf32> to vector<8xf32>
    %323 = vector.shape_cast %322 : vector<8xf32> to vector<8x1xf32>
    %324 = vector.broadcast %323 : vector<8x1xf32> to vector<8x8xf32>
    %325 = arith.subf %321, %324 : vector<8x8xf32>
    %326 = math.exp %325 : vector<8x8xf32>
    %cst_130 = arith.constant dense<0.000000e+00> : vector<8xf32>
    %327 = vector.multi_reduction <add>, %326, %cst_130 [1] : vector<8x8xf32> to vector<8xf32>
    %328 = vector.shape_cast %327 : vector<8xf32> to vector<8x1xf32>
    %329 = tpu.reciprocal %328 {approx = true} : vector<8x1xf32> -> vector<8x1xf32>
    %330 = vector.broadcast %329 : vector<8x1xf32> to vector<8x8xf32>
    %331 = arith.mulf %326, %330 : vector<8x8xf32>
    %332 = arith.truncf %331 : vector<8x8xf32> to vector<8x8xbf16>
    %cst_131 = arith.constant dense<0.000000e+00> : vector<8x4xf32>
    %333 = tpu.matmul %332, %320, %cst_131 {dimension_numbers = #tpu.dot_dimension_numbers<[1], [0], [0], [1], [0, 0, 1, 1], [], []>} : vector<8x8xbf16>, vector<8x4xbf16>, vector<8x4xf32> -> vector<8x4xf32>
    %c0_132 = arith.constant 0 : index
    %c20_133 = arith.constant 20 : index
    %334 = vector.load %arg15[%c0_132, %c20_133] : memref<8x32xf32, #tpu.memory_space<vmem>>, vector<8x4xf32>
    tpu.vector_store %arg15[%c0_132, %c20_133], %333 {strides = array<i32>} : memref<8x32xf32, #tpu.memory_space<vmem>>, vector<8x4xf32>,
    %335 = vector.extract_strided_slice %232 {offsets = [0, 24], sizes = [8, 4], strides = [1, 1]} : vector<8x96xbf16> to vector<8x4xbf16>
    %336 = vector.extract_strided_slice %232 {offsets = [0, 56], sizes = [8, 4], strides = [1, 1]} : vector<8x96xbf16> to vector<8x4xbf16>
    %337 = vector.extract_strided_slice %232 {offsets = [0, 88], sizes = [8, 4], strides = [1, 1]} : vector<8x96xbf16> to vector<8x4xbf16>
    %cst_134 = arith.constant dense<0.000000e+00> : vector<8x8xf32>
    %338 = tpu.matmul %335, %336, %cst_134 {dimension_numbers = #tpu.dot_dimension_numbers<[1], [1], [0], [0], [0, 0, 1, 0], [], []>} : vector<8x4xbf16>, vector<8x4xbf16>, vector<8x8xf32> -> vector<8x8xf32>
    %cst_135 = arith.constant dense<0xFF800000> : vector<8xf32>
    %339 = vector.multi_reduction <maximumf>, %338, %cst_135 [1] : vector<8x8xf32> to vector<8xf32>
    %340 = vector.shape_cast %339 : vector<8xf32> to vector<8x1xf32>
    %341 = vector.broadcast %340 : vector<8x1xf32> to vector<8x8xf32>
    %342 = arith.subf %338, %341 : vector<8x8xf32>
    %343 = math.exp %342 : vector<8x8xf32>
    %cst_136 = arith.constant dense<0.000000e+00> : vector<8xf32>
    %344 = vector.multi_reduction <add>, %343, %cst_136 [1] : vector<8x8xf32> to vector<8xf32>
    %345 = vector.shape_cast %344 : vector<8xf32> to vector<8x1xf32>
    %346 = tpu.reciprocal %345 {approx = true} : vector<8x1xf32> -> vector<8x1xf32>
    %347 = vector.broadcast %346 : vector<8x1xf32> to vector<8x8xf32>
    %348 = arith.mulf %343, %347 : vector<8x8xf32>
    %349 = arith.truncf %348 : vector<8x8xf32> to vector<8x8xbf16>
    %cst_137 = arith.constant dense<0.000000e+00> : vector<8x4xf32>
    %350 = tpu.matmul %349, %337, %cst_137 {dimension_numbers = #tpu.dot_dimension_numbers<[1], [0], [0], [1], [0, 0, 1, 1], [], []>} : vector<8x8xbf16>, vector<8x4xbf16>, vector<8x4xf32> -> vector<8x4xf32>
    %c0_138 = arith.constant 0 : index
    %c24_139 = arith.constant 24 : index
    %351 = vector.load %arg15[%c0_138, %c24_139] : memref<8x32xf32, #tpu.memory_space<vmem>>, vector<8x4xf32>
    tpu.vector_store %arg15[%c0_138, %c24_139], %350 {strides = array<i32>} : memref<8x32xf32, #tpu.memory_space<vmem>>, vector<8x4xf32>,
    %352 = vector.extract_strided_slice %232 {offsets = [0, 28], sizes = [8, 4], strides = [1, 1]} : vector<8x96xbf16> to vector<8x4xbf16>
    %353 = vector.extract_strided_slice %232 {offsets = [0, 60], sizes = [8, 4], strides = [1, 1]} : vector<8x96xbf16> to vector<8x4xbf16>
    %354 = vector.extract_strided_slice %232 {offsets = [0, 92], sizes = [8, 4], strides = [1, 1]} : vector<8x96xbf16> to vector<8x4xbf16>
    %cst_140 = arith.constant dense<0.000000e+00> : vector<8x8xf32>
    %355 = tpu.matmul %352, %353, %cst_140 {dimension_numbers = #tpu.dot_dimension_numbers<[1], [1], [0], [0], [0, 0, 1, 0], [], []>} : vector<8x4xbf16>, vector<8x4xbf16>, vector<8x8xf32> -> vector<8x8xf32>
    %cst_141 = arith.constant dense<0xFF800000> : vector<8xf32>
    %356 = vector.multi_reduction <maximumf>, %355, %cst_141 [1] : vector<8x8xf32> to vector<8xf32>
    %357 = vector.shape_cast %356 : vector<8xf32> to vector<8x1xf32>
    %358 = vector.broadcast %357 : vector<8x1xf32> to vector<8x8xf32>
    %359 = arith.subf %355, %358 : vector<8x8xf32>
    %360 = math.exp %359 : vector<8x8xf32>
    %cst_142 = arith.constant dense<0.000000e+00> : vector<8xf32>
    %361 = vector.multi_reduction <add>, %360, %cst_142 [1] : vector<8x8xf32> to vector<8xf32>
    %362 = vector.shape_cast %361 : vector<8xf32> to vector<8x1xf32>
    %363 = tpu.reciprocal %362 {approx = true} : vector<8x1xf32> -> vector<8x1xf32>
    %364 = vector.broadcast %363 : vector<8x1xf32> to vector<8x8xf32>
    %365 = arith.mulf %360, %364 : vector<8x8xf32>
    %366 = arith.truncf %365 : vector<8x8xf32> to vector<8x8xbf16>
    %cst_143 = arith.constant dense<0.000000e+00> : vector<8x4xf32>
    %367 = tpu.matmul %366, %354, %cst_143 {dimension_numbers = #tpu.dot_dimension_numbers<[1], [0], [0], [1], [0, 0, 1, 1], [], []>} : vector<8x8xbf16>, vector<8x4xbf16>, vector<8x4xf32> -> vector<8x4xf32>
    %c0_144 = arith.constant 0 : index
    %c28_145 = arith.constant 28 : index
    %368 = vector.load %arg15[%c0_144, %c28_145] : memref<8x32xf32, #tpu.memory_space<vmem>>, vector<8x4xf32>
    tpu.vector_store %arg15[%c0_144, %c28_145], %367 {strides = array<i32>} : memref<8x32xf32, #tpu.memory_space<vmem>>, vector<8x4xf32>,
    %c0_146 = arith.constant 0 : index
    %c0_147 = arith.constant 0 : index
    %369 = vector.load %arg15[%c0_146, %c0_147] : memref<8x32xf32, #tpu.memory_space<vmem>>, vector<8x32xf32>
    %370 = arith.truncf %369 : vector<8x32xf32> to vector<8x32xbf16>
    %c1_148 = arith.constant 1 : index
    %c0_149 = arith.constant 0 : index
    %c0_150 = arith.constant 0 : index
    %371 = vector.load %arg4[%c1_148, %c0_149, %c0_150] : memref<2x32x32xbf16, #tpu.memory_space<vmem>>, vector<1x32x32xbf16>
    %372 = vector.shape_cast %371 : vector<1x32x32xbf16> to vector<32x32xbf16>
    %cst_151 = arith.constant dense<0.000000e+00> : vector<8x32xf32>
    %373 = tpu.matmul %370, %372, %cst_151 {dimension_numbers = #tpu.dot_dimension_numbers<[1], [0], [0], [1], [0, 0, 1, 1], [], []>} : vector<8x32xbf16>, vector<32x32xbf16>, vector<8x32xf32> -> vector<8x32xf32>
    %c1_152 = arith.constant 1 : index
    %c0_153 = arith.constant 0 : index
    %c0_154 = arith.constant 0 : index
    %374 = vector.load %arg5[%c1_152, %c0_153, %c0_154] : memref<2x1x32xf32, #tpu.memory_space<vmem>>, vector<1x1x32xf32>
    %375 = vector.shape_cast %374 : vector<1x1x32xf32> to vector<1x32xf32>
    %376 = vector.broadcast %375 : vector<1x32xf32> to vector<8x32xf32>
    %377 = arith.addf %373, %376 : vector<8x32xf32>
    %378 = arith.addf %377, %377 : vector<8x32xf32>
    %c1_155 = arith.constant 1 : index
    %c0_156 = arith.constant 0 : index
    %c0_157 = arith.constant 0 : index
    %379 = vector.load %arg6[%c1_155, %c0_156, %c0_157] : memref<2x1x32xf32, #tpu.memory_space<vmem>>, vector<1x1x32xf32>
    %380 = vector.shape_cast %379 : vector<1x1x32xf32> to vector<1x32xf32>
    %c1_158 = arith.constant 1 : index
    %c0_159 = arith.constant 0 : index
    %c0_160 = arith.constant 0 : index
    %381 = vector.load %arg7[%c1_158, %c0_159, %c0_160] : memref<2x1x32xf32, #tpu.memory_space<vmem>>, vector<1x1x32xf32>
    %382 = vector.shape_cast %381 : vector<1x1x32xf32> to vector<1x32xf32>
    %cst_161 = arith.constant dense<0.000000e+00> : vector<8xf32>
    %383 = vector.multi_reduction <add>, %378, %cst_161 [1] : vector<8x32xf32> to vector<8xf32>
    %384 = vector.shape_cast %383 : vector<8xf32> to vector<8x1xf32>
    %cst_162 = arith.constant 3.200000e+01 : f32
    %385 = vector.broadcast %cst_162 : f32 to vector<8x1xf32>
    %386 = arith.divf %384, %385 : vector<8x1xf32>
    %387 = arith.mulf %378, %378 : vector<8x32xf32>
    %cst_163 = arith.constant dense<0.000000e+00> : vector<8xf32>
    %388 = vector.multi_reduction <add>, %387, %cst_163 [1] : vector<8x32xf32> to vector<8xf32>
    %389 = vector.shape_cast %388 : vector<8xf32> to vector<8x1xf32>
    %cst_164 = arith.constant 3.200000e+01 : f32
    %390 = vector.broadcast %cst_164 : f32 to vector<8x1xf32>
    %391 = arith.divf %389, %390 : vector<8x1xf32>
    %392 = arith.mulf %386, %386 : vector<8x1xf32>
    %393 = arith.subf %391, %392 : vector<8x1xf32>
    %394 = vector.broadcast %386 : vector<8x1xf32> to vector<8x32xf32>
    %395 = arith.subf %378, %394 : vector<8x32xf32>
    %cst_165 = arith.constant 9.99999974E-6 : f32
    %396 = vector.broadcast %cst_165 : f32 to vector<8x1xf32>
    %397 = arith.addf %393, %396 : vector<8x1xf32>
    %398 = math.rsqrt %397 : vector<8x1xf32>
    %399 = vector.broadcast %398 : vector<8x1xf32> to vector<8x32xf32>
    %400 = arith.mulf %395, %399 : vector<8x32xf32>
    %401 = vector.broadcast %380 : vector<1x32xf32> to vector<8x32xf32>
    %402 = arith.mulf %400, %401 : vector<8x32xf32>
    %403 = vector.broadcast %382 : vector<1x32xf32> to vector<8x32xf32>
    %404 = arith.addf %402, %403 : vector<8x32xf32>
    %405 = arith.truncf %404 : vector<8x32xf32> to vector<8x32xbf16>
    %c1_166 = arith.constant 1 : index
    %c0_167 = arith.constant 0 : index
    %c0_168 = arith.constant 0 : index
    %406 = vector.load %arg8[%c1_166, %c0_167, %c0_168] : memref<2x32x128xbf16, #tpu.memory_space<vmem>>, vector<1x32x128xbf16>
    %407 = vector.shape_cast %406 : vector<1x32x128xbf16> to vector<32x128xbf16>
    %cst_169 = arith.constant dense<0.000000e+00> : vector<8x128xf32>
    %408 = tpu.matmul %405, %407, %cst_169 {dimension_numbers = #tpu.dot_dimension_numbers<[1], [0], [0], [1], [0, 0, 1, 1], [], []>} : vector<8x32xbf16>, vector<32x128xbf16>, vector<8x128xf32> -> vector<8x128xf32>
    %c1_170 = arith.constant 1 : index
    %c0_171 = arith.constant 0 : index
    %c0_172 = arith.constant 0 : index
    %409 = vector.load %arg9[%c1_170, %c0_171, %c0_172] : memref<2x1x128xf32, #tpu.memory_space<vmem>>, vector<1x1x128xf32>
    %410 = vector.shape_cast %409 : vector<1x1x128xf32> to vector<1x128xf32>
    %411 = vector.broadcast %410 : vector<1x128xf32> to vector<8x128xf32>
    %412 = arith.addf %408, %411 : vector<8x128xf32>
    %cst_173 = arith.constant 0.000000e+00 : f32
    %413 = vector.broadcast %cst_173 : f32 to vector<8x128xf32>
    %414 = arith.maximumf %412, %413 : vector<8x128xf32>
    %415 = arith.truncf %414 : vector<8x128xf32> to vector<8x128xbf16>
    %c1_174 = arith.constant 1 : index
    %c0_175 = arith.constant 0 : index
    %c0_176 = arith.constant 0 : index
    %416 = vector.load %arg10[%c1_174, %c0_175, %c0_176] : memref<2x128x32xbf16, #tpu.memory_space<vmem>>, vector<1x128x32xbf16>
    %417 = vector.shape_cast %416 : vector<1x128x32xbf16> to vector<128x32xbf16>
    %cst_177 = arith.constant dense<0.000000e+00> : vector<8x32xf32>
    %418 = tpu.matmul %415, %417, %cst_177 {dimension_numbers = #tpu.dot_dimension_numbers<[1], [0], [0], [1], [0, 0, 1, 1], [], []>} : vector<8x128xbf16>, vector<128x32xbf16>, vector<8x32xf32> -> vector<8x32xf32>
    %c1_178 = arith.constant 1 : index
    %c0_179 = arith.constant 0 : index
    %c0_180 = arith.constant 0 : index
    %419 = vector.load %arg11[%c1_178, %c0_179, %c0_180] : memref<2x1x32xf32, #tpu.memory_space<vmem>>, vector<1x1x32xf32>
    %420 = vector.shape_cast %419 : vector<1x1x32xf32> to vector<1x32xf32>
    %421 = vector.broadcast %420 : vector<1x32xf32> to vector<8x32xf32>
    %422 = arith.addf %418, %421 : vector<8x32xf32>
    %423 = arith.addf %422, %404 : vector<8x32xf32>
    %c1_181 = arith.constant 1 : index
    %c0_182 = arith.constant 0 : index
    %c0_183 = arith.constant 0 : index
    %424 = vector.load %arg12[%c1_181, %c0_182, %c0_183] : memref<2x1x32xf32, #tpu.memory_space<vmem>>, vector<1x1x32xf32>
    %425 = vector.shape_cast %424 : vector<1x1x32xf32> to vector<1x32xf32>
    %c1_184 = arith.constant 1 : index
    %c0_185 = arith.constant 0 : index
    %c0_186 = arith.constant 0 : index
    %426 = vector.load %arg13[%c1_184, %c0_185, %c0_186] : memref<2x1x32xf32, #tpu.memory_space<vmem>>, vector<1x1x32xf32>
    %427 = vector.shape_cast %426 : vector<1x1x32xf32> to vector<1x32xf32>
    %cst_187 = arith.constant dense<0.000000e+00> : vector<8xf32>
    %428 = vector.multi_reduction <add>, %423, %cst_187 [1] : vector<8x32xf32> to vector<8xf32>
    %429 = vector.shape_cast %428 : vector<8xf32> to vector<8x1xf32>
    %cst_188 = arith.constant 3.200000e+01 : f32
    %430 = vector.broadcast %cst_188 : f32 to vector<8x1xf32>
    %431 = arith.divf %429, %430 : vector<8x1xf32>
    %432 = arith.mulf %423, %423 : vector<8x32xf32>
    %cst_189 = arith.constant dense<0.000000e+00> : vector<8xf32>
    %433 = vector.multi_reduction <add>, %432, %cst_189 [1] : vector<8x32xf32> to vector<8xf32>
    %434 = vector.shape_cast %433 : vector<8xf32> to vector<8x1xf32>
    %cst_190 = arith.constant 3.200000e+01 : f32
    %435 = vector.broadcast %cst_190 : f32 to vector<8x1xf32>
    %436 = arith.divf %434, %435 : vector<8x1xf32>
    %437 = arith.mulf %431, %431 : vector<8x1xf32>
    %438 = arith.subf %436, %437 : vector<8x1xf32>
    %439 = vector.broadcast %431 : vector<8x1xf32> to vector<8x32xf32>
    %440 = arith.subf %423, %439 : vector<8x32xf32>
    %cst_191 = arith.constant 9.99999974E-6 : f32
    %441 = vector.broadcast %cst_191 : f32 to vector<8x1xf32>
    %442 = arith.addf %438, %441 : vector<8x1xf32>
    %443 = math.rsqrt %442 : vector<8x1xf32>
    %444 = vector.broadcast %443 : vector<8x1xf32> to vector<8x32xf32>
    %445 = arith.mulf %440, %444 : vector<8x32xf32>
    %446 = vector.broadcast %425 : vector<1x32xf32> to vector<8x32xf32>
    %447 = arith.mulf %445, %446 : vector<8x32xf32>
    %448 = vector.broadcast %427 : vector<1x32xf32> to vector<8x32xf32>
    %449 = arith.addf %447, %448 : vector<8x32xf32>
    %c0_192 = arith.constant 0 : index
    %c0_193 = arith.constant 0 : index
    %c0_194 = arith.constant 0 : index
    %450 = vector.load %arg14[%c0_192, %c0_193, %c0_194] : memref<1x8x32xf32, #tpu.memory_space<vmem>>, vector<1x8x32xf32>
    %451 = vector.shape_cast %450 : vector<1x8x32xf32> to vector<8x32xf32>
    %452 = vector.shape_cast %449 : vector<8x32xf32> to vector<1x8x32xf32>
    tpu.vector_store %arg14[%c0_192, %c0_193, %c0_194], %452 {strides = array<i32>} : memref<1x8x32xf32, #tpu.memory_space<vmem>>, vector<1x8x32xf32>,
    return
  }
  func.func @transform_0(%arg0: i32) -> (i32, i32, i32) {
    %c0_i32 = arith.constant 0 : i32
    %c0_i32_0 = arith.constant 0 : i32
    %c0_i32_1 = arith.constant 0 : i32
    return %arg0, %c0_i32, %c0_i32_0 : i32, i32, i32
  }
  func.func @transform_1(%arg0: i32) -> (i32, i32) {
    %c0_i32 = arith.constant 0 : i32
    %c0_i32_0 = arith.constant 0 : i32
    %c0_i32_1 = arith.constant 0 : i32
    return %c0_i32, %c0_i32_0 : i32, i32
  }
  func.func @transform_2(%arg0: i32) -> (i32, i32, i32) {
    %c0_i32 = arith.constant 0 : i32
    %c0_i32_0 = arith.constant 0 : i32
    %c0_i32_1 = arith.constant 0 : i32
    %c0_i32_2 = arith.constant 0 : i32
    return %c0_i32, %c0_i32_0, %c0_i32_1 : i32, i32, i32
  }
  func.func @transform_3(%arg0: i32) -> (i32, i32, i32) {
    %c0_i32 = arith.constant 0 : i32
    %c0_i32_0 = arith.constant 0 : i32
    %c0_i32_1 = arith.constant 0 : i32
    %c0_i32_2 = arith.constant 0 : i32
    return %c0_i32, %c0_i32_0, %c0_i32_1 : i32, i32, i32
  }
  func.func @transform_4(%arg0: i32) -> (i32, i32, i32) {
    %c0_i32 = arith.constant 0 : i32
    %c0_i32_0 = arith.constant 0 : i32
    %c0_i32_1 = arith.constant 0 : i32
    %c0_i32_2 = arith.constant 0 : i32
    return %c0_i32, %c0_i32_0, %c0_i32_1 : i32, i32, i32
  }
  func.func @transform_5(%arg0: i32) -> (i32, i32, i32) {
    %c0_i32 = arith.constant 0 : i32
    %c0_i32_0 = arith.constant 0 : i32
    %c0_i32_1 = arith.constant 0 : i32
    %c0_i32_2 = arith.constant 0 : i32
    return %c0_i32, %c0_i32_0, %c0_i32_1 : i32, i32, i32
  }
  func.func @transform_6(%arg0: i32) -> (i32, i32, i32) {
    %c0_i32 = arith.constant 0 : i32
    %c0_i32_0 = arith.constant 0 : i32
    %c0_i32_1 = arith.constant 0 : i32
    %c0_i32_2 = arith.constant 0 : i32
    return %c0_i32, %c0_i32_0, %c0_i32_1 : i32, i32, i32
  }
  func.func @transform_7(%arg0: i32) -> (i32, i32, i32) {
    %c0_i32 = arith.constant 0 : i32
    %c0_i32_0 = arith.constant 0 : i32
    %c0_i32_1 = arith.constant 0 : i32
    %c0_i32_2 = arith.constant 0 : i32
    return %c0_i32, %c0_i32_0, %c0_i32_1 : i32, i32, i32
  }
  func.func @transform_8(%arg0: i32) -> (i32, i32, i32) {
    %c0_i32 = arith.constant 0 : i32
    %c0_i32_0 = arith.constant 0 : i32
    %c0_i32_1 = arith.constant 0 : i32
    %c0_i32_2 = arith.constant 0 : i32
    return %c0_i32, %c0_i32_0, %c0_i32_1 : i32, i32, i32
  }
  func.func @transform_9(%arg0: i32) -> (i32, i32, i32) {
    %c0_i32 = arith.constant 0 : i32
    %c0_i32_0 = arith.constant 0 : i32
    %c0_i32_1 = arith.constant 0 : i32
    %c0_i32_2 = arith.constant 0 : i32
    return %c0_i32, %c0_i32_0, %c0_i32_1 : i32, i32, i32
  }
  func.func @transform_10(%arg0: i32) -> (i32, i32, i32) {
    %c0_i32 = arith.constant 0 : i32
    %c0_i32_0 = arith.constant 0 : i32
    %c0_i32_1 = arith.constant 0 : i32
    %c0_i32_2 = arith.constant 0 : i32
    return %c0_i32, %c0_i32_0, %c0_i32_1 : i32, i32, i32
  }
  func.func @transform_11(%arg0: i32) -> (i32, i32, i32) {
    %c0_i32 = arith.constant 0 : i32
    %c0_i32_0 = arith.constant 0 : i32
    %c0_i32_1 = arith.constant 0 : i32
    %c0_i32_2 = arith.constant 0 : i32
    return %c0_i32, %c0_i32_0, %c0_i32_1 : i32, i32, i32
  }
  func.func @transform_12(%arg0: i32) -> (i32, i32, i32) {
    %c0_i32 = arith.constant 0 : i32
    %c0_i32_0 = arith.constant 0 : i32
    %c0_i32_1 = arith.constant 0 : i32
    %c0_i32_2 = arith.constant 0 : i32
    return %c0_i32, %c0_i32_0, %c0_i32_1 : i32, i32, i32
  }
  func.func @transform_13(%arg0: i32) -> (i32, i32, i32) {
    %c0_i32 = arith.constant 0 : i32
    %c0_i32_0 = arith.constant 0 : i32
    %c0_i32_1 = arith.constant 0 : i32
    return %arg0, %c0_i32, %c0_i32_0 : i32, i32, i32
  }
}

</mosaic_0001>

<bundles_post_ra>
// kernel: tpu_custom_call.1
= control target key start
LH: loop header
LB: loop body
LE: loop exit
PB: predicated region body
PF: predicated region fallthrough
CT: control target
= control target key end

     0   :  { %s4586_s0 = inlined_call_operand.vmem [shape: f32[2,8,32], index: 0, kind: input, shape index: {}]   ;;  %s4587_s1 = inlined_call_operand.vmem [shape: f32[8,32], index: 1, kind: input, shape index: {}]   ;;  %s4588_s2 = inlined_call_operand.vmem [shape: bf16[2,32,96], index: 2, kind: input, shape index: {}]   ;;  %s4589_s3 = inlined_call_operand.vmem [shape: bf16[2,32,32], index: 3, kind: input, shape index: {}]   ;;  %s4590_s4 = inlined_call_operand.vmem [shape: f32[2,1,32], index: 4, kind: input, shape index: {}]   ;;  %s4591_s5 = inlined_call_operand.vmem [shape: f32[2,1,32], index: 5, kind: input, shape index: {}]   ;;  %s4592_s6 = inlined_call_operand.vmem [shape: f32[2,1,32], index: 6, kind: input, shape index: {}]   ;;  %s4593_s7 = inlined_call_operand.vmem [shape: bf16[2,32,128], index: 7, kind: input, shape index: {}]   ;;  %s4594_s8 = inlined_call_operand.vmem [shape: f32[2,1,128], index: 8, kind: input, shape index: {}]   ;;  %s4595_s9 = inlined_call_operand.vmem [shape: bf16[2,128,32], index: 9, kind: input, shape index: {}]   ;;  %s4596_s10 = inlined_call_operand.vmem [shape: f32[2,1,32], index: 10, kind: input, shape index: {}]   ;;  %s4597_s11 = inlined_call_operand.vmem [shape: f32[2,1,32], index: 11, kind: input, shape index: {}]   ;;  %s4598_s12 = inlined_call_operand.vmem [shape: f32[2,1,32], index: 12, kind: input, shape index: {}]   ;;  %s4599_s13 = inlined_call_operand.hbm [shape: f32[2,8,32], index: 13, kind: output, shape index: {}]  }
   0x1   :  { %4630 = sst [smem:[#allocation6_spill]] %s4586_s0 }
   0x2   :  { %4631 = sst [smem:[#allocation7_spill]] %s4587_s1 }
   0x3   :  { %4632 = sst [smem:[#allocation8_spill]] %s4588_s2 }
   0x4   :  { %4633 = sst [smem:[#allocation9_spill]] %s4589_s3 }
   0x5   :  { %4634 = sst [smem:[#allocation10_spill]] %s4590_s4 }
   0x6   :  { %18 = vsyncpa [#allocation4], 0 }
   0x7   :  { %20 = vsyncpa [#allocation4 + $0x1], 0  ;;  %s3955_s25 = smov 0   ;;  %s3957_s26 = smov 0  }
   0x8   :  { %s3959_s27 = smov 0   ;;  %s3961_s28 = smov 0  }
   0x9 LB: > { %s3976_s29 = sadd.s32 4294967295, %s3850_s28   ;;  %s3114_s30 = sadd.s32 4294967294, %s3850_s28   ;;  %s3850_s28 = sphi %s3961_s28, %s4675_s28   ;;  %s3846_s27 = sphi %s3959_s27, %s4674_s27   ;;  %s3842_s26 = sphi %s3957_s26, %s4673_s26   ;;  %s3838_s25 = sphi %s3955_s25, %s4672_s25  }
   0xa   : > { %s3980_s14 = sadd.s32 1, %s3850_s28   ;;  %s311_s15 = sadd.s32 1, %s3846_s27 }
   0xb   : > { %s308_s16 = ssub.s32 %s3850_s28, %s3980_s14  ;;  %p321_p0 = scmp.ne.s32.totalorder %s3846_s27, %s3842_s26 }
   0xc   : > { %p309_p1 = scmp.eq.s32.totalorder %s308_s16, 0  ;;  %p322_p2 = scmp.eq.s32.totalorder %s3976_s29, 1 }
   0xd   : > { %p327_p3 = scmp.ne.s32.totalorder %s3842_s26, %s3838_s25  ;;  %p328_p4 = scmp.eq.s32.totalorder %s3114_s30, 1 }
   0xe   : > { %s3991_s17 = scalar_select %p309_p1, %s3846_s27, %s311_s15  }
   0xf   : > { %p3993_p5 = por %p322_p2, %p321_p0  ;;  %p3997_p6 = por %p328_p4, %p327_p3 }
  0x10   : > { %p3117_p7 = scmp.ge.s32.totalorder %s3850_s28, 1  ;;  %p389_p8 = scmp.lt.s32.totalorder %s3850_s28, 3 }
  0x12   : > { %p390_p9 = pnand %p3117_p7, %p389_p8 }
  0x13   : > { %s4637_s2 = sld [smem:[#allocation8_spill]] (!%p390_p9)  ;;  %p432_p10 = scmp.lt.s32.totalorder (!%p390_p9), %s3976_s29, 1 }
  0x14   : > { %393 = sbr.rel (%p390_p9) target bundleno = 5411 (0x1523), region = 72  ;;  %s4638_s1 = sld [smem:[#allocation7_spill]] (!%p390_p9) }
  0x15   : > { %s4639_s0 = sld [smem:[#allocation6_spill]] (!%p390_p9)  ;;  %s4603_s23 = smov (!%p390_p9), 64  }
  0x16   : > { %s4602_s15 = smov (!%p390_p9), 84   ;;  %s4600_s16 = smov (!%p390_p9), 72  }
  0x17   : > { %s4601_s20 = smov (!%p390_p9), 68   ;;  %s4604_s21 = smov (!%p390_p9), 124  }
  0x18   : > { %s4640_s3 = sld [smem:[#allocation9_spill]] (!%p390_p9) }
  0x19   : > { %v3690_v0 = vld [vmem:[%s4637_s2 + $0x8] sm:$0xff]   ;;  %v3852_v1 = vmov 0.0   ;;  %v3691_v2 = vld [vmem:[%s4637_s2] sm:$0xff]   ;;  %vm3853_vm0 = vmmov 0   ;;  %s433_s24 = scalar_select %p432_p10, %s3976_s29, 1  ;;  %vm458_vm1 = vcmask 261120  }
  0x1a   : > { %3339 = vmatprep.subr.bf16.mxu1 %v3852_v1  ;;  %3365 = vmatprep.subr.bf16.mxu0 %v3852_v1  ;;  %v439_v3 = vld [vmem:[%s4638_s1] sm:$0xff]  ;;  %vm506_vm2 = vcmask 31744   ;;  %vm571_vm3 = vcmask 1043456   ;;  %vm553_vm4 = vcmask 64512   ;;  %vm730_vm5 = vcmask 64544   ;;  %s4641_s4 = sld [smem:[#allocation10_spill]] }
  0x1b   : > { %3340 = vmatpush3.bf16.msra.mxu1 %v3690_v0  ;;  %3343 = vmatprep.mubr.msk.bf16.mxu1 %vm3853_vm0, %v3852_v1  ;;  %s3119_s30 = sshll.u32 %s433_s24, 3  ;;  %s4629_s24 = smov 96   ;;  %vm846_vm6 = vcmask 97344   ;;  %vm962_vm7 = vcmask 130144   ;;  %vm1078_vm8 = vcmask 162944   ;;  %vm1194_vm9 = vcmask 195744  }
  0x1c   : > { %3341 = vmatprep.subr.bf16.mxu1 %v3852_v1  ;;  %3367 = vmatprep.mubr.msk.bf16.mxu0 %vm3853_vm0, %v3852_v1  ;;  %s435_s22 = scalar_lea.vmem %s4639_s0, %s3119_s30  ;;  %s4628_s30 = smov 92   ;;  %vm1310_vm10 = vcmask 228544   ;;  %vm1426_vm11 = vcmask 261344  }
  0x1d   : > { %v437_v4 = vld [vmem:[%s435_s22] sm:$0xff]  ;;  %s4605_s22 = smov 88  }
  0x1e   : > { %v438_v5 = vmul.f32 5.656854, %v437_v4 }
  0x1f   : > { %3342 = vmatpush3.bf16.msra.mxu1 %v3691_v2 }
  0x20   : > { %3347 = vmatprep.subr.bf16.mxu1 %v3852_v1  ;;  %v440_v6 = vadd.f32 %v439_v3, %v438_v5 }
  0x22   : > { %v441_v7 = vpack.c.bf16 %v440_v6, %v440_v6 }
  0x24   : > { %3344 = vmatmul.mubr.msk.bf16.vlgmr.msra.gmra.mxu1 %vm458_vm1, %v441_v7 }
  0x25   : > { %3349 = vmatprep.mubr.msk.bf16.mxu1 %vm3853_vm0, %v3852_v1 }
  0xe4   : > { %v496_v8 = vpop.f32.mrf.mxu1 }
  0xe5   : > { %v4028_v9 = vpack.c.bf16 %v496_v8, %v496_v8 }
  0xe6   : > { %v3345_v10 = vpop.f32.mrf.mxu1 }
  0xe7   : > { %566 = vrot.lane.b32.xlu1 %v4028_v9, %s4603_s23  ;;  %504 = vrot.lane.b32.xlu0 %v4028_v9, %s4629_s24  ;;  %s4623_s23 = smov 112   ;;  %s4643_s24 = smov 92  }
  0xe8   : > { %v499_v11 = vpop.f32.mrf.mxu1 }
  0xea   : > { %v3346_v12 = vpop.f32.mrf.mxu1 }
  0xeb   : > { %618 = vrot.lane.b32.xlu1 %v4028_v9, %s4628_s30  ;;  %s4644_s30 = smov 124  }
 0x159   : > { %v505_v13 = vpop.permute.xlu0 %504  ;;  %v567_v15 = vpop.permute.xlu1 %566 }
 0x15a   : > { %v511_v14 = vsel %vm506_vm2, %v505_v13, 0  ;;  %v573_v16 = vsel %vm571_vm3, %v567_v15, 0 }
 0x15b   : > { %3348 = vmatpush3.bf16.xpose.msra.mxu1 %v511_v14 }
 0x15c   : > { %3353 = vmatprep.subr.bf16.mxu1 %v3852_v1 }
 0x15d   : > { %v619_v27 = vpop.permute.xlu1 %618 }
 0x15e   : > { %v624_v34 = vsel %vm506_vm2, %v619_v27, 0 }
 0x162   : > { %3350 = vmatmul.mubr.msk.bf16.vlgmr.msra.gmra.mxu1 %vm506_vm2, %v4028_v9 }
 0x163   : > { %3354 = vmatpush3.bf16.msra.mxu1 %v573_v16  ;;  %3355 = vmatprep.mubr.msk.bf16.mxu1 %vm3853_vm0, %v3852_v1 }
 0x164   : > { %3359 = vmatprep.subr.bf16.mxu1 %v3852_v1 }
 0x222   : > { %v547_v17 = vpop.f32.mrf.mxu1 }
 0x223   : > { %v554_v18 = vsel %vm553_vm4, %v547_v17, -inf }
 0x224   : > { %555 = vmax.xlane.f32.xlu0 %v554_v18  ;;  %v3351_v19 = vpop.f32.mrf.mxu1 }
 0x226   : > { %v550_v20 = vpop.f32.mrf.mxu1 }
 0x228   : > { %v3352_v21 = vpop.f32.mrf.mxu1 }
 0x23a   : > { %850 = vrot.lane.b32.xlu0 %v4028_v9, %s4602_s15  ;;  %s4609_s15 = smov 80  }
 0x23e   : > { %1198 = vrot.lane.b32.xlu0 %v4028_v9, %s4600_s16  ;;  %s4606_s16 = smov 120  }
 0x242   : > { %1314 = vrot.lane.b32.xlu0 %v4028_v9, %s4601_s20  ;;  %s4607_s20 = smov 116  }
 0x2ad   : > { %v556_v22 = vpop.xlane.xlu0 %555 }
 0x2ae   : > { %v557_v23 = vsub.f32 %v547_v17, %v556_v22 }
 0x2b0   : > { %v558_v24 = vmul.f32 1.442695, %v557_v23 }
 0x2b1   : > { %v851_v38 = vpop.permute.xlu0 %850 }
 0x2b2   : > { %3718 = vpow2.f32 %v558_v24  ;;  %v856_v39 = vsel %vm506_vm2, %v851_v38, 0 }
 0x2b5   : > { %v1199_v45 = vpop.permute.xlu0 %1198 }
 0x2b6   : > { %v1204_v47 = vsel %vm506_vm2, %v1199_v45, 0 }
 0x2b9   : > { %v1315_v48 = vpop.permute.xlu0 %1314 }
 0x2ba   : > { %v1320_v50 = vsel %vm506_vm2, %v1315_v48, 0 }
 0x2bf   : > { %v3719_v25 = vpop.eup %3718 }
 0x2c0   : > { %v560_v26 = vsel %vm553_vm4, %v3719_v25, 0.0 }
 0x2c1   : > { %561 = vadd.xlane.f32.xlu1 %v560_v26 }
 0x2d2   : > { %616 = vrot.lane.b32.xlu1 %v4028_v9, %s4604_s21  ;;  %s4608_s21 = smov 76  }
 0x2d6   : > { %734 = vrot.lane.b32.xlu1 %v4028_v9, %s4605_s22  ;;  %s4621_s22 = smov 108  }
 0x2da   : > { %732 = vrot.lane.b32.xlu1 %v4028_v9, %s4606_s16  ;;  %s4618_s16 = smov 104  }
 0x2de   : > { %848 = vrot.lane.b32.xlu1 %v4028_v9, %s4607_s20  ;;  %s4614_s20 = smov 100  }
 0x2e2   : > { %966 = vrot.lane.b32.xlu1 %v4028_v9, %s4609_s15  ;;  %s4610_s15 = smov 60  }
 0x2e6   : > { %964 = vrot.lane.b32.xlu1 %v4028_v9, %s4623_s23  ;;  %s4648_s23 = smov 112  }
 0x2ea   : > { %1082 = vrot.lane.b32.xlu1 %v4028_v9, %s4608_s21  ;;  %s4611_s21 = smov 56  }
 0x2ee   : > { %1080 = vrot.lane.b32.xlu1 %v4028_v9, %s4621_s22  ;;  %s4647_s22 = smov 116  }
 0x2f2   : > { %1196 = vrot.lane.b32.xlu1 %v4028_v9, %s4618_s16  ;;  %s4624_s16 = smov 16  }
 0x2f6   : > { %1312 = vrot.lane.b32.xlu1 %v4028_v9, %s4614_s20  ;;  %s4615_s20 = smov 44  }
 0x34a   : > { %v562_v28 = vpop.xlane.xlu1 %561 }
 0x34b   : > { %3720 = vrcp.f32 %v562_v28 }
 0x34e   : > { %v617_v29 = vpop.permute.xlu1 %616 }
 0x352   : > { %v735_v33 = vpop.permute.xlu1 %734 }
 0x353   : > { %v740_v36 = vsel %vm506_vm2, %v735_v33, 0 }
 0x356   : > { %v733_v35 = vpop.permute.xlu1 %732 }
 0x358   : > { %v3721_v30 = vpop.eup %3720 }
 0x359   : > { %v564_v31 = vmul.f32 %v3721_v30, %v3719_v25 }
 0x35a   : > { %v849_v37 = vpop.permute.xlu1 %848 }
 0x35b   : > { %v565_v32 = vpack.c.bf16 %v564_v31, %v564_v31 }
 0x35d   : > { %3356 = vmatmul.mubr.msk.bf16.vlgmr.msra.gmra.mxu1 %vm553_vm4, %v565_v32 }
 0x35e   : > { %3360 = vmatpush3.bf16.xpose.msra.mxu1 %v624_v34  ;;  %3361 = vmatprep.mubr.msk.bf16.mxu1 %vm3853_vm0, %v3852_v1  ;;  %v967_v40 = vpop.permute.xlu1 %966 }
 0x35f   : > { %3371 = vmatprep.subr.bf16.mxu1 %v3852_v1  ;;  %v972_v42 = vsel %vm506_vm2, %v967_v40, 0 }
 0x362   : > { %v965_v41 = vpop.permute.xlu1 %964 }
 0x365   : > { %3362 = vmatmul.mubr.msk.bf16.vlgmr.msra.gmra.mxu1 %vm506_vm2, %v617_v29 }
 0x366   : > { %3372 = vmatpush3.bf16.xpose.msra.mxu1 %v740_v36  ;;  %3373 = vmatprep.mubr.msk.bf16.mxu1 %vm3853_vm0, %v3852_v1  ;;  %v1083_v43 = vpop.permute.xlu1 %1082 }
 0x367   : > { %3383 = vmatprep.subr.bf16.mxu1 %v3852_v1  ;;  %v1088_v44 = vsel %vm506_vm2, %v1083_v43, 0 }
 0x36a   : > { %v1081_v46 = vpop.permute.xlu1 %1080 }
 0x36d   : > { %3374 = vmatmul.mubr.msk.bf16.vlgmr.msra.gmra.mxu1 %vm506_vm2, %v733_v35 }
 0x36e   : > { %3384 = vmatpush3.bf16.xpose.msra.mxu1 %v856_v39  ;;  %3385 = vmatprep.mubr.msk.bf16.mxu1 %vm3853_vm0, %v3852_v1  ;;  %v1197_v49 = vpop.permute.xlu1 %1196 }
 0x36f   : > { %3395 = vmatprep.subr.bf16.mxu1 %v3852_v1 }
 0x372   : > { %v1313_v51 = vpop.permute.xlu1 %1312 }
 0x375   : > { %3386 = vmatmul.mubr.msk.bf16.vlgmr.msra.gmra.mxu1 %vm506_vm2, %v849_v37 }
 0x376   : > { %3396 = vmatpush3.bf16.xpose.msra.mxu1 %v972_v42  ;;  %3397 = vmatprep.mubr.msk.bf16.mxu1 %vm3853_vm0, %v3852_v1 }
 0x377   : > { %3407 = vmatprep.subr.bf16.mxu1 %v3852_v1 }
 0x37d   : > { %3398 = vmatmul.mubr.msk.bf16.vlgmr.msra.gmra.mxu1 %vm506_vm2, %v965_v41 }
 0x37e   : > { %3408 = vmatpush3.bf16.xpose.msra.mxu1 %v1088_v44  ;;  %3409 = vmatprep.mubr.msk.bf16.mxu1 %vm3853_vm0, %v3852_v1 }
 0x37f   : > { %3419 = vmatprep.subr.bf16.mxu1 %v3852_v1 }
 0x385   : > { %3410 = vmatmul.mubr.msk.bf16.vlgmr.msra.gmra.mxu1 %vm506_vm2, %v1081_v46 }
 0x386   : > { %3420 = vmatpush3.bf16.xpose.msra.mxu1 %v1204_v47  ;;  %3421 = vmatprep.mubr.msk.bf16.mxu1 %vm3853_vm0, %v3852_v1 }
 0x387   : > { %3431 = vmatprep.subr.bf16.mxu1 %v3852_v1 }
 0x38d   : > { %3422 = vmatmul.mubr.msk.bf16.vlgmr.msra.gmra.mxu1 %vm506_vm2, %v1197_v49 }
 0x38e   : > { %3432 = vmatpush3.bf16.xpose.msra.mxu1 %v1320_v50  ;;  %3433 = vmatprep.mubr.msk.bf16.mxu1 %vm3853_vm0, %v3852_v1 }
 0x38f   : > { %3443 = vmatprep.subr.bf16.mxu1 %v3852_v1 }
 0x395   : > { %3434 = vmatmul.mubr.msk.bf16.vlgmr.msra.gmra.mxu1 %vm506_vm2, %v1313_v51 }
 0x396   : > { %3447 = vmatprep.mubr.msk.bf16.mxu1 %vm3853_vm0, %v3852_v1 }
 0x41d   : > { %v609_v52 = vpop.f32.mrf.mxu1 }
 0x41e   : > { %615 = vst.msk [vmem:[#allocation2] sm:$0xff] %vm506_vm2, %v609_v52 }
 0x41f   : > { %v3357_v53 = vpop.f32.mrf.mxu1 }
 0x421   : > { %v612_v54 = vpop.f32.mrf.mxu1 }
 0x423   : > { %v3358_v55 = vpop.f32.mrf.mxu1 }
 0x425   : > { %v660_v56 = vpop.f32.mrf.mxu1 }
 0x426   : > { %v666_v57 = vsel %vm553_vm4, %v660_v56, -inf }
 0x427   : > { %667 = vmax.xlane.f32.xlu0 %v666_v57  ;;  %v3363_v58 = vpop.f32.mrf.mxu1 }
 0x429   : > { %v663_v59 = vpop.f32.mrf.mxu1 }
 0x42b   : > { %v3364_v60 = vpop.f32.mrf.mxu1 }
 0x42d   : > { %v776_v61 = vpop.f32.mrf.mxu1 }
 0x42e   : > { %v782_v62 = vsel %vm553_vm4, %v776_v61, -inf }
 0x42f   : > { %783 = vmax.xlane.f32.xlu1 %v782_v62  ;;  %v3375_v63 = vpop.f32.mrf.mxu1 }
 0x431   : > { %v779_v0 = vpop.f32.mrf.mxu1 }
 0x433   : > { %v3376_v2 = vpop.f32.mrf.mxu1 }
 0x435   : > { %v892_v3 = vpop.f32.mrf.mxu1 }
 0x436   : > { %v898_v4 = vsel %vm553_vm4, %v892_v3, -inf }
 0x437   : > { %899 = vmax.xlane.f32.xlu0 %v898_v4  ;;  %v3387_v5 = vpop.f32.mrf.mxu1 }
 0x439   : > { %v895_v6 = vpop.f32.mrf.mxu1 }
 0x43b   : > { %v3388_v7 = vpop.f32.mrf.mxu1 }
 0x43d   : > { %v1008_v8 = vpop.f32.mrf.mxu1 }
 0x43e   : > { %v1014_v10 = vsel %vm553_vm4, %v1008_v8, -inf }
 0x43f   : > { %1015 = vmax.xlane.f32.xlu0 %v1014_v10  ;;  %v3399_v11 = vpop.f32.mrf.mxu1 }
 0x441   : > { %v1011_v12 = vpop.f32.mrf.mxu1 }
 0x443   : > { %v3400_v13 = vpop.f32.mrf.mxu1 }
 0x445   : > { %v1124_v14 = vpop.f32.mrf.mxu1 }
 0x446   : > { %v1130_v15 = vsel %vm553_vm4, %v1124_v14, -inf }
 0x447   : > { %1131 = vmax.xlane.f32.xlu1 %v1130_v15  ;;  %v3411_v16 = vpop.f32.mrf.mxu1 }
 0x449   : > { %v1127_v17 = vpop.f32.mrf.mxu1 }
 0x44b   : > { %v3412_v18 = vpop.f32.mrf.mxu1 }
 0x44d   : > { %v1240_v19 = vpop.f32.mrf.mxu1 }
 0x44e   : > { %v1246_v20 = vsel %vm553_vm4, %v1240_v19, -inf }
 0x44f   : > { %1247 = vmax.xlane.f32.xlu0 %v1246_v20  ;;  %v3423_v21 = vpop.f32.mrf.mxu1 }
 0x451   : > { %v1243_v22 = vpop.f32.mrf.mxu1 }
 0x453   : > { %v3424_v23 = vpop.f32.mrf.mxu1 }
 0x455   : > { %v1356_v24 = vpop.f32.mrf.mxu1 }
 0x456   : > { %v1362_v28 = vsel %vm553_vm4, %v1356_v24, -inf }
 0x457   : > { %v3435_v25 = vpop.f32.mrf.mxu1 }
 0x458   : > { %794 = vrot.lane.b32.xlu1 %v4028_v9, %s4611_s21  ;;  %s4612_s21 = smov 48  }
 0x459   : > { %v1359_v26 = vpop.f32.mrf.mxu1 }
 0x45b   : > { %v3436_v27 = vpop.f32.mrf.mxu1 }
 0x465   : > { %678 = vrot.lane.b32.xlu0 %v4028_v9, %s4610_s15  ;;  %s4613_s15 = smov 52  }
 0x47c   : > { %1363 = vmax.xlane.f32.xlu1 %v1362_v28 }
 0x4b0   : > { %v668_v29 = vpop.xlane.xlu0 %667 }
 0x4b1   : > { %v669_v30 = vsub.f32 %v660_v56, %v668_v29 }
 0x4b3   : > { %v670_v31 = vmul.f32 1.442695, %v669_v30 }
 0x4b5   : > { %3722 = vpow2.f32 %v670_v31 }
 0x4b8   : > { %v784_v32 = vpop.xlane.xlu1 %783 }
 0x4b9   : > { %v785_v33 = vsub.f32 %v776_v61, %v784_v32 }
 0x4bb   : > { %v786_v34 = vmul.f32 1.442695, %v785_v33 }
 0x4bd   : > { %3724 = vpow2.f32 %v786_v34 }
 0x4c0   : > { %v900_v35 = vpop.xlane.xlu0 %899 }
 0x4c1   : > { %v901_v36 = vsub.f32 %v892_v3, %v900_v35 }
 0x4c2   : > { %v3723_v37 = vpop.eup %3722 }
 0x4c3   : > { %v902_v38 = vmul.f32 1.442695, %v901_v36  ;;  %v672_v39 = vsel %vm553_vm4, %v3723_v37, 0.0 }
 0x4c4   : > { %673 = vadd.xlane.f32.xlu0 %v672_v39 }
 0x4c5   : > { %3726 = vpow2.f32 %v902_v38 }
 0x4c8   : > { %v1016_v44 = vpop.xlane.xlu0 %1015 }
 0x4c9   : > { %v1017_v48 = vsub.f32 %v1008_v8, %v1016_v44 }
 0x4ca   : > { %v4123_v40 = vpop.eup %3724 }
 0x4cb   : > { %v788_v41 = vsel %vm553_vm4, %v4123_v40, 0.0  ;;  %v1018_v50 = vmul.f32 1.442695, %v1017_v48 }
 0x4cc   : > { %789 = vadd.xlane.f32.xlu1 %v788_v41 }
 0x4cd   : > { %3728 = vpow2.f32 %v1018_v50 }
 0x4d0   : > { %v1132_v49 = vpop.xlane.xlu1 %1131 }
 0x4d1   : > { %v1133_v51 = vsub.f32 %v1124_v14, %v1132_v49 }
 0x4d2   : > { %v4127_v42 = vpop.eup %3726 }
 0x4d3   : > { %v904_v43 = vsel %vm553_vm4, %v4127_v42, 0.0  ;;  %v1134_v52 = vmul.f32 1.442695, %v1133_v51 }
 0x4d4   : > { %905 = vadd.xlane.f32.xlu0 %v904_v43  ;;  %v795_v58 = vpop.permute.xlu1 %794 }
 0x4d5   : > { %3730 = vpow2.f32 %v1134_v52  ;;  %v800_v11 = vsel %vm571_vm3, %v795_v58, 0 }
 0x4d8   : > { %v1248_v45 = vpop.xlane.xlu0 %1247 }
 0x4d9   : > { %v1249_v53 = vsub.f32 %v1240_v19, %v1248_v45 }
 0x4da   : > { %v3729_v55 = vpop.eup %3728 }
 0x4db   : > { %v1250_v54 = vmul.f32 1.442695, %v1249_v53  ;;  %v1020_v56 = vsel %vm553_vm4, %v3729_v55, 0.0 }
 0x4dc   : > { %v679_v46 = vpop.permute.xlu0 %678 }
 0x4dd   : > { %910 = vrot.lane.b32.xlu1 %v4028_v9, %s4613_s15  ;;  %v684_v47 = vsel %vm571_vm3, %v679_v46, 0  ;;  %3732 = vpow2.f32 %v1250_v54  ;;  %s4616_s15 = smov 36  }
 0x4de   : > { %3366 = vmatpush3.bf16.msra.mxu0 %v684_v47 }
 0x4df   : > { %3377 = vmatprep.subr.bf16.mxu0 %v3852_v1 }
 0x4e2   : > { %v4138_v57 = vpop.eup %3730 }
 0x4e3   : > { %v1136_v59 = vsel %vm553_vm4, %v4138_v57, 0.0 }
 0x4ea   : > { %1026 = vrot.lane.b32.xlu0 %v4028_v9, %s4612_s21  ;;  %v4142_v60 = vpop.eup %3732  ;;  %s4617_s21 = smov 40  }
 0x4eb   : > { %v1252_v0 = vsel %vm553_vm4, %v4142_v60, 0.0 }
 0x501   : > { %1021 = vadd.xlane.f32.xlu1 %v1020_v56 }
 0x505   : > { %1137 = vadd.xlane.f32.xlu1 %v1136_v59  ;;  %v1364_v61 = vpop.xlane.xlu1 %1363 }
 0x506   : > { %v1365_v62 = vsub.f32 %v1356_v24, %v1364_v61 }
 0x508   : > { %v1366_v63 = vmul.f32 1.442695, %v1365_v62  ;;  %v3692_v62 = vld [vmem:[%s4640_s3 + $0x8] sm:$0xff]  }
 0x509   : > { %1253 = vadd.xlane.f32.xlu0 %v1252_v0  ;;  %3444 = vmatpush3.bf16.msra.mxu1 %v3692_v62  ;;  %v3693_v0 = vld [vmem:[%s4640_s3] sm:$0xff]  }
 0x50a   : > { %3734 = vpow2.f32 %v1366_v63  ;;  %3445 = vmatprep.subr.bf16.mxu1 %v3852_v1  ;;  %v3149_v62 = vld [vmem:[%s4596_s10] ss:$0 sm:$0xff] }
 0x50d   : > { %3446 = vmatpush3.bf16.msra.mxu1 %v3693_v0 }
 0x50e   : > { %3459 = vmatprep.subr.bf16.mxu1 %v3852_v1 }
 0x517   : > { %v4146_v2 = vpop.eup %3734 }
 0x518   : > { %v1368_v3 = vsel %vm553_vm4, %v4146_v2, 0.0 }
 0x519   : > { %1369 = vadd.xlane.f32.xlu1 %v1368_v3 }
 0x51f   : > { %1258 = vrot.lane.b32.xlu0 %v4028_v9, %s4617_s21  ;;  %s4622_s21 = smov 12  }
 0x523   : > { %1374 = vrot.lane.b32.xlu0 %v4028_v9, %s4616_s15  ;;  %s4620_s15 = smov 8  }
 0x52a   : > { %1142 = vrot.lane.b32.xlu1 %v4028_v9, %s4615_s20  ;;  %s4619_s20 = smov 4  }
 0x54d   : > { %v674_v4 = vpop.xlane.xlu0 %673 }
 0x54e   : > { %3736 = vrcp.f32 %v674_v4 }
 0x555   : > { %v790_v5 = vpop.xlane.xlu1 %789 }
 0x556   : > { %3738 = vrcp.f32 %v790_v5 }
 0x559   : > { %v911_v13 = vpop.permute.xlu1 %910 }
 0x55a   : > { %v916_v15 = vsel %vm571_vm3, %v911_v13, 0 }
 0x55b   : > { %v3737_v6 = vpop.eup %3736 }
 0x55c   : > { %v676_v7 = vmul.f32 %v3737_v6, %v3723_v37 }
 0x55d   : > { %v906_v8 = vpop.xlane.xlu0 %905 }
 0x55e   : > { %3740 = vrcp.f32 %v906_v8  ;;  %v677_v10 = vpack.c.bf16 %v676_v7, %v676_v7 }
 0x560   : > { %3368 = vmatmul.mubr.msk.bf16.vlgmr.msra.gmra.mxu0 %vm553_vm4, %v677_v10 }
 0x561   : > { %3378 = vmatpush3.bf16.msra.mxu0 %v800_v11  ;;  %3379 = vmatprep.mubr.msk.bf16.mxu0 %vm3853_vm0, %v3852_v1  ;;  %v1027_v18 = vpop.permute.xlu0 %1026 }
 0x562   : > { %3389 = vmatprep.subr.bf16.mxu0 %v3852_v1  ;;  %v1032_v20 = vsel %vm571_vm3, %v1027_v18, 0 }
 0x563   : > { %v3739_v9 = vpop.eup %3738 }
 0x564   : > { %v792_v12 = vmul.f32 %v3739_v9, %v4123_v40 }
 0x566   : > { %v793_v14 = vpack.c.bf16 %v792_v12, %v792_v12 }
 0x568   : > { %3380 = vmatmul.mubr.msk.bf16.vlgmr.msra.gmra.mxu0 %vm553_vm4, %v793_v14 }
 0x569   : > { %3390 = vmatpush3.bf16.msra.mxu0 %v916_v15  ;;  %3391 = vmatprep.mubr.msk.bf16.mxu0 %vm3853_vm0, %v3852_v1 }
 0x56a   : > { %3401 = vmatprep.subr.bf16.mxu0 %v3852_v1 }
 0x56b   : > { %v3741_v16 = vpop.eup %3740 }
 0x56c   : > { %v908_v17 = vmul.f32 %v3741_v16, %v4127_v42 }
 0x56e   : > { %v909_v19 = vpack.c.bf16 %v908_v17, %v908_v17 }
 0x570   : > { %3392 = vmatmul.mubr.msk.bf16.vlgmr.msra.gmra.mxu0 %vm553_vm4, %v909_v19  ;;  %v3139_v19 = vld [vmem:[%s4641_s4] ss:$0 sm:$0xff] }
 0x571   : > { %3402 = vmatpush3.bf16.msra.mxu0 %v1032_v20  ;;  %3403 = vmatprep.mubr.msk.bf16.mxu0 %vm3853_vm0, %v3852_v1 }
 0x572   : > { %3413 = vmatprep.subr.bf16.mxu0 %v3852_v1 }
 0x58a   : > { %v1022_v21 = vpop.xlane.xlu1 %1021 }
 0x58b   : > { %3742 = vrcp.f32 %v1022_v21 }
 0x58e   : > { %v1138_v22 = vpop.xlane.xlu1 %1137 }
 0x58f   : > { %3744 = vrcp.f32 %v1138_v22 }
 0x592   : > { %v1254_v25 = vpop.xlane.xlu0 %1253 }
 0x593   : > { %3746 = vrcp.f32 %v1254_v25 }
 0x596   : > { %v1259_v32 = vpop.permute.xlu0 %1258 }
 0x597   : > { %v1264_v35 = vsel %vm571_vm3, %v1259_v32, 0  ;;  %v3697_v32 = vld [vmem:[%s4595_s9 + $0x30] sm:$0xff]  }
 0x598   : > { %v3743_v23 = vpop.eup %3742 }
 0x599   : > { %v1024_v24 = vmul.f32 %v3743_v23, %v3729_v55 }
 0x59a   : > { %v1375_v37 = vpop.permute.xlu0 %1374 }
 0x59b   : > { %v1025_v26 = vpack.c.bf16 %v1024_v24, %v1024_v24  ;;  %v1380_v40 = vsel %vm571_vm3, %v1375_v37, 0 }
 0x59c   : > { %v3745_v27 = vpop.eup %3744 }
 0x59d   : > { %3404 = vmatmul.mubr.msk.bf16.vlgmr.msra.gmra.mxu0 %vm553_vm4, %v1025_v26  ;;  %v1140_v29 = vmul.f32 %v3745_v27, %v4138_v57 }
 0x59e   : > { %3415 = vmatprep.mubr.msk.bf16.mxu0 %vm3853_vm0, %v3852_v1 }
 0x59f   : > { %v1141_v33 = vpack.c.bf16 %v1140_v29, %v1140_v29  ;;  %v3694_v29 = vld [vmem:[%s4593_s7 + $0x8] sm:$0xff]  }
 0x5a0   : > { %v3747_v34 = vpop.eup %3746 }
 0x5a1   : > { %v1256_v36 = vmul.f32 %v3747_v34, %v4142_v60  ;;  %v3699_v34 = vld [vmem:[%s4595_s9 + $0x20] sm:$0xff]  }
 0x5a2   : > { %v1370_v28 = vpop.xlane.xlu1 %1369 }
 0x5a3   : > { %3748 = vrcp.f32 %v1370_v28  ;;  %v1257_v38 = vpack.c.bf16 %v1256_v36, %v1256_v36  ;;  %v3701_v36 = vld [vmem:[%s4595_s9 + $0x10] sm:$0xff]  }
 0x5a6   : > { %v1143_v30 = vpop.permute.xlu1 %1142 }
 0x5a7   : > { %v1148_v31 = vsel %vm571_vm3, %v1143_v30, 0  ;;  %v3695_v30 = vld [vmem:[%s4593_s7] sm:$0xff]  }
 0x5a8   : > { %3414 = vmatpush3.bf16.msra.mxu0 %v1148_v31  ;;  %v3696_v31 = vld [vmem:[%s4595_s9 + $0x38] sm:$0xff]  }
 0x5a9   : > { %3425 = vmatprep.subr.bf16.mxu0 %v3852_v1 }
 0x5ab   : > { %3416 = vmatmul.mubr.msk.bf16.vlgmr.msra.gmra.mxu0 %vm553_vm4, %v1141_v33  ;;  %v3698_v33 = vld [vmem:[%s4595_s9 + $0x28] sm:$0xff]  }
 0x5ac   : > { %3426 = vmatpush3.bf16.msra.mxu0 %v1264_v35  ;;  %3427 = vmatprep.mubr.msk.bf16.mxu0 %vm3853_vm0, %v3852_v1  ;;  %v3700_v35 = vld [vmem:[%s4595_s9 + $0x18] sm:$0xff]  }
 0x5ad   : > { %3437 = vmatprep.subr.bf16.mxu0 %v3852_v1 }
 0x5b0   : > { %v3749_v39 = vpop.eup %3748 }
 0x5b1   : > { %v1372_v41 = vmul.f32 %v3749_v39, %v4146_v2 }
 0x5b3   : > { %3428 = vmatmul.mubr.msk.bf16.vlgmr.msra.gmra.mxu0 %vm553_vm4, %v1257_v38  ;;  %v1373_v42 = vpack.c.bf16 %v1372_v41, %v1372_v41 }
 0x5b4   : > { %3438 = vmatpush3.bf16.msra.mxu0 %v1380_v40  ;;  %3439 = vmatprep.mubr.msk.bf16.mxu0 %vm3853_vm0, %v3852_v1 }
 0x5b5   : > { %3451 = vmatprep.subr.bf16.mxu0 %v3852_v1 }
 0x5bb   : > { %3440 = vmatmul.mubr.msk.bf16.vlgmr.msra.gmra.mxu0 %vm553_vm4, %v1373_v42 }
 0x5bc   : > { %3455 = vmatprep.mubr.msk.bf16.mxu0 %vm3853_vm0, %v3852_v1  ;;  %3452 = vmatpush3.bf16.msra.mxu0 %v3694_v29 }
 0x5bd   : > { %3453 = vmatprep.subr.bf16.mxu0 %v3852_v1 }
 0x5c0   : > { %3454 = vmatpush3.bf16.msra.mxu0 %v3695_v30 }
 0x5c1   : > { %3479 = vmatprep.subr.bf16.mxu0 %v3852_v1 }
 0x620   : > { %v720_v43 = vpop.f32.mrf.mxu0 }
 0x621   : > { %727 = vrot.lane.b32.xlu1 %v720_v43, %s4619_s20  ;;  %s4627_s20 = smov 20  }
 0x622   : > { %v3369_v44 = vpop.f32.mrf.mxu0 }
 0x624   : > { %v723_v45 = vpop.f32.mrf.mxu0 }
 0x626   : > { %v3370_v46 = vpop.f32.mrf.mxu0 }
 0x627   : > { %v3143_v46 = vld [vmem:[%s4591_s5] ss:$0 sm:$0xff] }
 0x628   : > { %v836_v47 = vpop.f32.mrf.mxu0 }
 0x629   : > { %843 = vrot.lane.b32.xlu0 %v836_v47, %s4620_s15  ;;  %s4625_s15 = smov 28  }
 0x62a   : > { %v3381_v48 = vpop.f32.mrf.mxu0 }
 0x62b   : > { %v3144_v48 = vld [vmem:[%s4592_s6] ss:$0 sm:$0xff] }
 0x62c   : > { %v839_v49 = vpop.f32.mrf.mxu0 }
 0x62e   : > { %v3382_v50 = vpop.f32.mrf.mxu0 }
 0x630   : > { %v952_v51 = vpop.f32.mrf.mxu0 }
 0x631   : > { %959 = vrot.lane.b32.xlu1 %v952_v51, %s4622_s21  ;;  %s4649_s21 = smov 108  }
 0x632   : > { %v3393_v52 = vpop.f32.mrf.mxu0 }
 0x633   : > { %v3702_v52 = vld [vmem:[%s4595_s9 + $0x8] sm:$0xff]  }
 0x634   : > { %v955_v53 = vpop.f32.mrf.mxu0 }
 0x635   : > { %v3703_v53 = vld [vmem:[%s4595_s9] sm:$0xff]  }
 0x636   : > { %v3394_v54 = vpop.f32.mrf.mxu0 }
 0x637   : > { %v3145_v54 = vld [vmem:[%s4594_s8] ss:$0 sm:$0xff] }
 0x65d   : > { %v1068_v55 = vpop.f32.mrf.mxu0 }
 0x65e   : > { %1075 = vrot.lane.b32.xlu0 %v1068_v55, %s4624_s16  ;;  %s4626_s16 = smov 24  }
 0x65f   : > { %v3405_v56 = vpop.f32.mrf.mxu0 }
 0x661   : > { %v1071_v57 = vpop.f32.mrf.mxu0 }
 0x663   : > { %v3406_v58 = vpop.f32.mrf.mxu0 }
 0x66b   : > { %v1184_v59 = vpop.f32.mrf.mxu0 }
 0x66c   : > { %1191 = vrot.lane.b32.xlu1 %v1184_v59, %s4627_s20  ;;  %s4645_s20 = smov 88  }
 0x66d   : > { %v3417_v60 = vpop.f32.mrf.mxu0 }
 0x66f   : > { %v1187_v61 = vpop.f32.mrf.mxu0 }
 0x671   : > { %v3418_v63 = vpop.f32.mrf.mxu0 }
 0x673   : > { %v1300_v2 = vpop.f32.mrf.mxu0 }
 0x674   : > { %1307 = vrot.lane.b32.xlu0 %v1300_v2, %s4626_s16  ;;  %s4642_s16 = smov 96  }
 0x675   : > { %v3429_v3 = vpop.f32.mrf.mxu0 }
 0x677   : > { %v1303_v4 = vpop.f32.mrf.mxu0 }
 0x679   : > { %v3430_v5 = vpop.f32.mrf.mxu0 }
 0x67b   : > { %v1416_v6 = vpop.f32.mrf.mxu0 }
 0x67c   : > { %1423 = vrot.lane.b32.xlu1 %v1416_v6, %s4625_s15  ;;  %s4646_s15 = smov 120  }
 0x67d   : > { %v3441_v7 = vpop.f32.mrf.mxu0 }
 0x67f   : > { %v1419_v8 = vpop.f32.mrf.mxu0 }
 0x681   : > { %v3442_v10 = vpop.f32.mrf.mxu0 }
 0x682   : > { %v3704_v10 = vld [vmem:[%s4637_s2 + $0x18] sm:$0xff]  }
 0x693   : > { %v728_v11 = vpop.permute.xlu1 %727 }
 0x694   : > { %731 = vst.msk [vmem:[#allocation2] sm:$0xff] %vm730_vm5, %v728_v11  ;;  %v3705_v11 = vld [vmem:[%s4637_s2 + $0x10] sm:$0xff]  }
 0x69b   : > { %v844_v9 = vpop.permute.xlu0 %843 }
 0x69c   : > { %847 = vst.msk [vmem:[#allocation2] sm:$0xff] %vm846_vm6, %v844_v9 }
 0x6a3   : > { %v960_v12 = vpop.permute.xlu1 %959 }
 0x6a4   : > { %963 = vst.msk [vmem:[#allocation2] sm:$0xff] %vm962_vm7, %v960_v12 }
 0x6d0   : > { %v1076_v13 = vpop.permute.xlu0 %1075 }
 0x6d1   : > { %1079 = vst.msk [vmem:[#allocation2] sm:$0xff] %vm1078_vm8, %v1076_v13 }
 0x6de   : > { %v1192_v14 = vpop.permute.xlu1 %1191 }
 0x6df   : > { %1195 = vst.msk [vmem:[#allocation2] sm:$0xff] %vm1194_vm9, %v1192_v14 }
 0x6e6   : > { %v1308_v15 = vpop.permute.xlu0 %1307 }
 0x6e7   : > { %1311 = vst.msk [vmem:[#allocation2] sm:$0xff] %vm1310_vm10, %v1308_v15 }
 0x6ee   : > { %v1424_v16 = vpop.permute.xlu1 %1423 }
 0x6ef   : > { %1427 = vst.msk [vmem:[#allocation2] sm:$0xff] %vm1426_vm11, %v1424_v16 }
 0x6f6   : > { %v1428_v17 = vld [vmem:[#allocation2] sm:$0xff] }
 0x6f7   : > { %v1429_v18 = vpack.c.bf16 %v1428_v17, %v1428_v17 }
 0x6f9   : > { %3448 = vmatmul.mubr.msk.bf16.vlgmr.msra.gmra.mxu1 %vm458_vm1, %v1429_v18 }
 0x6fa   : > { %3475 = vmatprep.mubr.msk.bf16.mxu1 %vm3853_vm0, %v3852_v1  ;;  %3460 = vmatpush3.bf16.msra.mxu1 %v3696_v31 }
 0x6fb   : > { %3461 = vmatprep.subr.bf16.mxu1 %v3852_v1 }
 0x6fe   : > { %3462 = vmatpush3.bf16.msra.mxu1 %v3697_v32 }
 0x6ff   : > { %3463 = vmatprep.subr.bf16.mxu1 %v3852_v1 }
 0x702   : > { %3464 = vmatpush3.bf16.msra.mxu1 %v3698_v33 }
 0x703   : > { %3465 = vmatprep.subr.bf16.mxu1 %v3852_v1 }
 0x706   : > { %3466 = vmatpush3.bf16.msra.mxu1 %v3699_v34 }
 0x707   : > { %3467 = vmatprep.subr.bf16.mxu1 %v3852_v1 }
 0x70a   : > { %3468 = vmatpush3.bf16.msra.mxu1 %v3700_v35 }
 0x70b   : > { %3469 = vmatprep.subr.bf16.mxu1 %v3852_v1 }
 0x70e   : > { %3470 = vmatpush3.bf16.msra.mxu1 %v3701_v36 }
 0x70f   : > { %3471 = vmatprep.subr.bf16.mxu1 %v3852_v1 }
 0x712   : > { %3472 = vmatpush3.bf16.msra.mxu1 %v3702_v52 }
 0x713   : > { %3473 = vmatprep.subr.bf16.mxu1 %v3852_v1 }
 0x716   : > { %3474 = vmatpush3.bf16.msra.mxu1 %v3703_v53 }
 0x717   : > { %3505 = vmatprep.subr.bf16.mxu1 %v3852_v1 }
 0x7b9   : > { %v1490_v20 = vpop.f32.mrf.mxu1 }
 0x7ba   : > { %v1491_v21 = vadd.f32 %v3139_v19, %v1490_v20  ;;  %v3158_v20 = vld [vmem:[%s4597_s11] ss:$0 sm:$0xff] }
 0x7bb   : > { %v3449_v22 = vpop.f32.mrf.mxu1 }
 0x7bc   : > { %v1496_v23 = vadd.f32 %v1491_v21, %v1491_v21  ;;  %v3159_v22 = vld [vmem:[%s4598_s12] ss:$0 sm:$0xff] }
 0x7bd   : > { %v1493_v24 = vpop.f32.mrf.mxu1 }
 0x7be   : > { %v1499_v25 = vsel %vm458_vm1, %v1496_v23, 0.0  ;;  %v1504_v26 = vmul.f32 %v1496_v23, %v1496_v23 }
 0x7bf   : > { %1500 = vadd.xlane.f32.xlu0 %v1499_v25  ;;  %v3450_v27 = vpop.f32.mrf.mxu1 }
 0x7c0   : > { %v1505_v28 = vsel %vm458_vm1, %v1504_v26, 0.0 }
 0x7c1   : > { %1506 = vadd.xlane.f32.xlu1 %v1505_v28 }
 0x848   : > { %v1501_v37 = vpop.xlane.xlu0 %1500 }
 0x849   : > { %v1503_v38 = vmul.f32 0.03125, %v1501_v37 }
 0x84a   : > { %v1507_v39 = vpop.xlane.xlu1 %1506 }
 0x84b   : > { %v1509_v40 = vmul.f32 %v1503_v38, %v1503_v38  ;;  %v1508_v41 = vmul.f32 0.03125, %v1507_v39  ;;  %v1511_v44 = vsub.f32 %v1496_v23, %v1503_v38 }
 0x84d   : > { %v1510_v42 = vsub.f32 %v1508_v41, %v1509_v40 }
 0x84f   : > { %v1512_v43 = vadd.f32 1e-05, %v1510_v42 }
 0x851   : > { %3750 = vrsqrt.f32 %v1512_v43 }
 0x85e   : > { %v3751_v45 = vpop.eup %3750 }
 0x85f   : > { %v1514_v47 = vmul.f32 %v3751_v45, %v1511_v44 }
 0x861   : > { %v1521_v49 = vmul.f32 %v3143_v46, %v1514_v47 }
 0x863   : > { %v1528_v50 = vadd.f32 %v3144_v48, %v1521_v49 }
 0x865   : > { %v1529_v51 = vpack.c.bf16 %v1528_v50, %v1528_v50 }
 0x867   : > { %3456 = vmatmul.mubr.msk.bf16.vlgmr.msra.gmra.mxu0 %vm458_vm1, %v1529_v51 }
 0x868   : > { %3483 = vmatprep.mubr.msk.bf16.mxu0 %vm3853_vm0, %v3852_v1  ;;  %3480 = vmatpush3.bf16.msra.mxu0 %v3704_v10 }
 0x869   : > { %3481 = vmatprep.subr.bf16.mxu0 %v3852_v1 }
 0x86c   : > { %3482 = vmatpush3.bf16.msra.mxu0 %v3705_v11 }
 0x86d   : > { %3487 = vmatprep.subr.bf16.mxu0 %v3852_v1 }
 0x927   : > { %v1590_v55 = vpop.f32.mrf.mxu0 }
 0x928   : > { %v1591_v56 = vadd.f32 %v3145_v54, %v1590_v55 }
 0x929   : > { %v3457_v57 = vpop.f32.mrf.mxu0 }
 0x92a   : > { %v1596_v58 = vmax.f32 %v1591_v56, 0.0 }
 0x92b   : > { %v1593_v59 = vpop.f32.mrf.mxu0 }
 0x92c   : > { %v1597_v60 = vpack.c.bf16 %v1596_v58, %v1596_v58 }
 0x92d   : > { %v3458_v61 = vpop.f32.mrf.mxu0 }
 0x92e   : > { %3476 = vmatmul.mubr.bf16.vlgmr.msra.gmra.mxu1 %v1597_v60 }
 0x92f   : > { %3507 = vmatprep.mubr.msk.bf16.mxu1 %vm3853_vm0, %v3852_v1 }
 0x9ee   : > { %v1703_v63 = vpop.f32.mrf.mxu1 }
 0x9ef   : > { %v1704_v0 = vadd.f32 %v3149_v62, %v1703_v63 }
 0x9f0   : > { %v3477_v2 = vpop.f32.mrf.mxu1 }
 0x9f1   : > { %v1709_v3 = vadd.f32 %v1704_v0, %v1528_v50 }
 0x9f2   : > { %v1706_v4 = vpop.f32.mrf.mxu1 }
 0x9f3   : > { %v1712_v5 = vsel %vm458_vm1, %v1709_v3, 0.0  ;;  %v1716_v6 = vmul.f32 %v1709_v3, %v1709_v3 }
 0x9f4   : > { %1713 = vadd.xlane.f32.xlu0 %v1712_v5  ;;  %v3478_v7 = vpop.f32.mrf.mxu1 }
 0x9f5   : > { %v1717_v8 = vsel %vm458_vm1, %v1716_v6, 0.0 }
 0x9f8   : > { %1718 = vadd.xlane.f32.xlu0 %v1717_v8 }
 0xa7d   : > { %v1714_v9 = vpop.xlane.xlu0 %1713 }
 0xa7e   : > { %v1715_v12 = vmul.f32 0.03125, %v1714_v9 }
 0xa80   : > { %v1721_v14 = vmul.f32 %v1715_v12, %v1715_v12  ;;  %v1723_v18 = vsub.f32 %v1709_v3, %v1715_v12 }
 0xa81   : > { %v1719_v13 = vpop.xlane.xlu0 %1718 }
 0xa82   : > { %v1720_v15 = vmul.f32 0.03125, %v1719_v13 }
 0xa84   : > { %v1722_v16 = vsub.f32 %v1720_v15, %v1721_v14 }
 0xa86   : > { %v1724_v17 = vadd.f32 1e-05, %v1722_v16 }
 0xa88   : > { %3752 = vrsqrt.f32 %v1724_v17 }
 0xa95   : > { %v3753_v19 = vpop.eup %3752 }
 0xa96   : > { %v1726_v21 = vmul.f32 %v3753_v19, %v1723_v18 }
 0xa98   : > { %v1733_v23 = vmul.f32 %v3158_v20, %v1726_v21 }
 0xa9a   : > { %v1740_v24 = vadd.f32 %v3159_v22, %v1733_v23 }
 0xa9c   : > { %v1741_v25 = vpack.c.bf16 %v1740_v24, %v1740_v24 }
 0xa9e   : > { %3484 = vmatmul.mubr.msk.bf16.vlgmr.msra.gmra.mxu0 %vm458_vm1, %v1741_v25 }
 0xa9f   : > { %3489 = vmatprep.mubr.msk.bf16.mxu0 %vm3853_vm0, %v3852_v1 }
 0xb5e   : > { %v1796_v26 = vpop.f32.mrf.mxu0 }
 0xb5f   : > { %v4300_v27 = vpack.c.bf16 %v1796_v26, %v1796_v26 }
 0xb60   : > { %v3485_v28 = vpop.f32.mrf.mxu0 }
 0xb61   : > { %1804 = vrot.lane.b32.xlu1 %v4300_v27, %s4642_s16  ;;  %s4650_s16 = smov 104  }
 0xb62   : > { %v1799_v29 = vpop.f32.mrf.mxu0 }
 0xb64   : > { %v3486_v30 = vpop.f32.mrf.mxu0 }
 0xb65   : > { %1915 = vrot.lane.b32.xlu1 %v4300_v27, %s4643_s24  ;;  %s4651_s24 = smov 100  }
 0xb69   : > { %1913 = vrot.lane.b32.xlu1 %v4300_v27, %s4644_s30  ;;  %s4652_s30 = smov 64  }
 0xb6d   : > { %2030 = vrot.lane.b32.xlu1 %v4300_v27, %s4645_s20  ;;  %s4653_s20 = smov 84  }
 0xb71   : > { %2028 = vrot.lane.b32.xlu1 %v4300_v27, %s4646_s15  ;;  %s4654_s15 = smov 80  }
 0xb75   : > { %2143 = vrot.lane.b32.xlu1 %v4300_v27, %s4647_s22  ;;  %s4655_s22 = smov 76  }
 0xb79   : > { %2258 = vrot.lane.b32.xlu1 %v4300_v27, %s4648_s23  ;;  %s4656_s23 = smov 72  }
 0xb7d   : > { %2373 = vrot.lane.b32.xlu1 %v4300_v27, %s4649_s21  ;;  %s4657_s21 = smov 68  }
 0xb81   : > { %2488 = vrot.lane.b32.xlu1 %v4300_v27, %s4650_s16  ;;  %s4658_s16 = smov 56  }
 0xb85   : > { %2603 = vrot.lane.b32.xlu1 %v4300_v27, %s4651_s24  ;;  %s4659_s24 = smov 60  }
 0xbd3   : > { %v1805_v31 = vpop.permute.xlu1 %1804 }
 0xbd4   : > { %v1810_v32 = vsel %vm506_vm2, %v1805_v31, 0 }
 0xbd5   : > { %3488 = vmatpush3.bf16.xpose.msra.mxu0 %v1810_v32 }
 0xbd6   : > { %3493 = vmatprep.subr.bf16.mxu0 %v3852_v1 }
 0xbd7   : > { %v1916_v46 = vpop.permute.xlu1 %1915 }
 0xbd8   : > { %v1921_v51 = vsel %vm506_vm2, %v1916_v46, 0 }
 0xbdb   : > { %v1914_v50 = vpop.permute.xlu1 %1913 }
 0xbdc   : > { %3490 = vmatmul.mubr.msk.bf16.vlgmr.msra.gmra.mxu0 %vm506_vm2, %v4300_v27 }
 0xbdd   : > { %3495 = vmatprep.mubr.msk.bf16.mxu0 %vm3853_vm0, %v3852_v1 }
 0xbdf   : > { %v2031_v52 = vpop.permute.xlu1 %2030 }
 0xbe0   : > { %v2036_v53 = vsel %vm506_vm2, %v2031_v52, 0 }
 0xbe3   : > { %v2029_v55 = vpop.permute.xlu1 %2028 }
 0xbe7   : > { %v2144_v58 = vpop.permute.xlu1 %2143 }
 0xbeb   : > { %v2259_v61 = vpop.permute.xlu1 %2258 }
 0xbef   : > { %v2374_v0 = vpop.permute.xlu1 %2373 }
 0xbf3   : > { %v2489_v4 = vpop.permute.xlu1 %2488 }
 0xbf7   : > { %v2604_v6 = vpop.permute.xlu1 %2603 }
 0xc9c   : > { %v1846_v33 = vpop.f32.mrf.mxu0 }
 0xc9d   : > { %v1852_v34 = vsel %vm553_vm4, %v1846_v33, -inf }
 0xc9e   : > { %1853 = vmax.xlane.f32.xlu0 %v1852_v34  ;;  %v3491_v35 = vpop.f32.mrf.mxu0 }
 0xca0   : > { %v1849_v36 = vpop.f32.mrf.mxu0 }
 0xca2   : > { %v3492_v37 = vpop.f32.mrf.mxu0 }
 0xd27   : > { %v1854_v38 = vpop.xlane.xlu0 %1853 }
 0xd28   : > { %v1855_v39 = vsub.f32 %v1846_v33, %v1854_v38 }
 0xd2a   : > { %v1856_v40 = vmul.f32 1.442695, %v1855_v39 }
 0xd2c   : > { %3754 = vpow2.f32 %v1856_v40 }
 0xd39   : > { %v3755_v41 = vpop.eup %3754 }
 0xd3a   : > { %v1858_v42 = vsel %vm553_vm4, %v3755_v41, 0.0 }
 0xd3b   : > { %1859 = vadd.xlane.f32.xlu0 %v1858_v42 }
 0xd51   : > { %1864 = vrot.lane.b32.xlu0 %v4300_v27, %s4652_s30  ;;  %s4660_s30 = smov 52  }
 0xd55   : > { %2145 = vrot.lane.b32.xlu0 %v4300_v27, %s4653_s20  ;;  %s4661_s20 = smov 48  }
 0xd59   : > { %2260 = vrot.lane.b32.xlu0 %v4300_v27, %s4654_s15  ;;  %s4662_s15 = smov 40  }
 0xd5d   : > { %2375 = vrot.lane.b32.xlu0 %v4300_v27, %s4655_s22  ;;  %s4663_s22 = smov 36  }
 0xd61   : > { %2490 = vrot.lane.b32.xlu0 %v4300_v27, %s4656_s23  ;;  %s4664_s23 = smov 44  }
 0xd65   : > { %2605 = vrot.lane.b32.xlu0 %v4300_v27, %s4657_s21  ;;  %s4665_s21 = smov 4  }
 0xdc4   : > { %v1860_v43 = vpop.xlane.xlu0 %1859 }
 0xdc5   : > { %3756 = vrcp.f32 %v1860_v43 }
 0xdc8   : > { %v1865_v44 = vpop.permute.xlu0 %1864 }
 0xdc9   : > { %v1870_v45 = vsel %vm571_vm3, %v1865_v44, 0 }
 0xdca   : > { %3494 = vmatpush3.bf16.msra.mxu0 %v1870_v45 }
 0xdcb   : > { %3499 = vmatprep.subr.bf16.mxu0 %v3852_v1 }
 0xdcc   : > { %v2146_v54 = vpop.permute.xlu0 %2145 }
 0xdcd   : > { %v2151_v56 = vsel %vm506_vm2, %v2146_v54, 0 }
 0xdd0   : > { %v2261_v57 = vpop.permute.xlu0 %2260 }
 0xdd1   : > { %v2266_v59 = vsel %vm506_vm2, %v2261_v57, 0 }
 0xdd2   : > { %v3757_v47 = vpop.eup %3756 }
 0xdd3   : > { %v1862_v48 = vmul.f32 %v3757_v47, %v3755_v41 }
 0xdd4   : > { %v2376_v60 = vpop.permute.xlu0 %2375 }
 0xdd5   : > { %v1863_v49 = vpack.c.bf16 %v1862_v48, %v1862_v48  ;;  %v2381_v62 = vsel %vm506_vm2, %v2376_v60, 0 }
 0xdd7   : > { %3496 = vmatmul.mubr.msk.bf16.vlgmr.msra.gmra.mxu0 %vm553_vm4, %v1863_v49 }
 0xdd8   : > { %3500 = vmatpush3.bf16.xpose.msra.mxu0 %v1921_v51  ;;  %3501 = vmatprep.mubr.msk.bf16.mxu0 %vm3853_vm0, %v3852_v1  ;;  %v2491_v63 = vpop.permute.xlu0 %2490 }
 0xdd9   : > { %3511 = vmatprep.subr.bf16.mxu0 %v3852_v1  ;;  %v2496_v2 = vsel %vm506_vm2, %v2491_v63, 0 }
 0xddc   : > { %v2606_v3 = vpop.permute.xlu0 %2605 }
 0xddd   : > { %v2611_v5 = vsel %vm506_vm2, %v2606_v3, 0 }
 0xddf   : > { %3502 = vmatmul.mubr.msk.bf16.vlgmr.msra.gmra.mxu0 %vm506_vm2, %v1914_v50 }
 0xde0   : > { %3512 = vmatpush3.bf16.xpose.msra.mxu0 %v2036_v53  ;;  %3513 = vmatprep.mubr.msk.bf16.mxu0 %vm3853_vm0, %v3852_v1 }
 0xde1   : > { %3523 = vmatprep.subr.bf16.mxu0 %v3852_v1 }
 0xde7   : > { %3514 = vmatmul.mubr.msk.bf16.vlgmr.msra.gmra.mxu0 %vm506_vm2, %v2029_v55 }
 0xde8   : > { %3524 = vmatpush3.bf16.xpose.msra.mxu0 %v2151_v56  ;;  %3525 = vmatprep.mubr.msk.bf16.mxu0 %vm3853_vm0, %v3852_v1 }
 0xde9   : > { %3535 = vmatprep.subr.bf16.mxu0 %v3852_v1 }
 0xdef   : > { %3526 = vmatmul.mubr.msk.bf16.vlgmr.msra.gmra.mxu0 %vm506_vm2, %v2144_v58 }
 0xdf0   : > { %3536 = vmatpush3.bf16.xpose.msra.mxu0 %v2266_v59  ;;  %3537 = vmatprep.mubr.msk.bf16.mxu0 %vm3853_vm0, %v3852_v1 }
 0xdf1   : > { %3547 = vmatprep.subr.bf16.mxu0 %v3852_v1 }
 0xdf7   : > { %3538 = vmatmul.mubr.msk.bf16.vlgmr.msra.gmra.mxu0 %vm506_vm2, %v2259_v61 }
 0xdf8   : > { %3548 = vmatpush3.bf16.xpose.msra.mxu0 %v2381_v62  ;;  %3549 = vmatprep.mubr.msk.bf16.mxu0 %vm3853_vm0, %v3852_v1 }
 0xdf9   : > { %3559 = vmatprep.subr.bf16.mxu0 %v3852_v1 }
 0xdff   : > { %3550 = vmatmul.mubr.msk.bf16.vlgmr.msra.gmra.mxu0 %vm506_vm2, %v2374_v0 }
 0xe00   : > { %3560 = vmatpush3.bf16.xpose.msra.mxu0 %v2496_v2  ;;  %3561 = vmatprep.mubr.msk.bf16.mxu0 %vm3853_vm0, %v3852_v1 }
 0xe01   : > { %3571 = vmatprep.subr.bf16.mxu0 %v3852_v1 }
 0xe07   : > { %3562 = vmatmul.mubr.msk.bf16.vlgmr.msra.gmra.mxu0 %vm506_vm2, %v2489_v4 }
 0xe08   : > { %3572 = vmatpush3.bf16.xpose.msra.mxu0 %v2611_v5  ;;  %3573 = vmatprep.mubr.msk.bf16.mxu0 %vm3853_vm0, %v3852_v1 }
 0xe09   : > { %3583 = vmatprep.subr.bf16.mxu0 %v3852_v1 }
 0xe0f   : > { %3574 = vmatmul.mubr.msk.bf16.vlgmr.msra.gmra.mxu0 %vm506_vm2, %v2604_v6 }
 0xe10   : > { %3587 = vmatprep.mubr.msk.bf16.mxu0 %vm3853_vm0, %v3852_v1 }
 0xe97   : > { %v1906_v7 = vpop.f32.mrf.mxu0 }
 0xe98   : > { %1912 = vst.msk [vmem:[#allocation2] sm:$0xff] %vm506_vm2, %v1906_v7 }
 0xe99   : > { %v3497_v8 = vpop.f32.mrf.mxu0 }
 0xe9b   : > { %v1909_v10 = vpop.f32.mrf.mxu0 }
 0xe9d   : > { %v3498_v11 = vpop.f32.mrf.mxu0 }
 0xe9f   : > { %v1957_v9 = vpop.f32.mrf.mxu0 }
 0xea0   : > { %v1963_v12 = vsel %vm553_vm4, %v1957_v9, -inf }
 0xea1   : > { %1964 = vmax.xlane.f32.xlu0 %v1963_v12  ;;  %v3503_v13 = vpop.f32.mrf.mxu0 }
 0xea3   : > { %v1960_v14 = vpop.f32.mrf.mxu0 }
 0xea5   : > { %v3504_v15 = vpop.f32.mrf.mxu0 }
 0xea7   : > { %v2072_v16 = vpop.f32.mrf.mxu0 }
 0xea8   : > { %v2078_v17 = vsel %vm553_vm4, %v2072_v16, -inf }
 0xea9   : > { %2079 = vmax.xlane.f32.xlu1 %v2078_v17  ;;  %v3515_v18 = vpop.f32.mrf.mxu0 }
 0xeab   : > { %v2075_v19 = vpop.f32.mrf.mxu0 }
 0xead   : > { %v3516_v20 = vpop.f32.mrf.mxu0 }
 0xeaf   : > { %v2187_v21 = vpop.f32.mrf.mxu0 }
 0xeb0   : > { %v2193_v22 = vsel %vm553_vm4, %v2187_v21, -inf }
 0xeb1   : > { %2194 = vmax.xlane.f32.xlu0 %v2193_v22  ;;  %v3527_v23 = vpop.f32.mrf.mxu0 }
 0xeb3   : > { %v2190_v24 = vpop.f32.mrf.mxu0 }
 0xeb5   : > { %v3528_v25 = vpop.f32.mrf.mxu0 }
 0xeb7   : > { %v2302_v26 = vpop.f32.mrf.mxu0 }
 0xeb8   : > { %v2308_v28 = vsel %vm553_vm4, %v2302_v26, -inf }
 0xeb9   : > { %2309 = vmax.xlane.f32.xlu0 %v2308_v28  ;;  %v3539_v29 = vpop.f32.mrf.mxu0 }
 0xebb   : > { %v2305_v30 = vpop.f32.mrf.mxu0 }
 0xebd   : > { %v3540_v31 = vpop.f32.mrf.mxu0 }
 0xebf   : > { %v2417_v32 = vpop.f32.mrf.mxu0 }
 0xec0   : > { %v2423_v33 = vsel %vm553_vm4, %v2417_v32, -inf }
 0xec1   : > { %2424 = vmax.xlane.f32.xlu1 %v2423_v33  ;;  %v3551_v34 = vpop.f32.mrf.mxu0 }
 0xec3   : > { %v2420_v35 = vpop.f32.mrf.mxu0 }
 0xec5   : > { %v3552_v36 = vpop.f32.mrf.mxu0 }
 0xec7   : > { %v2532_v37 = vpop.f32.mrf.mxu0 }
 0xec8   : > { %v2538_v38 = vsel %vm553_vm4, %v2532_v37, -inf }
 0xec9   : > { %2539 = vmax.xlane.f32.xlu0 %v2538_v38  ;;  %v3563_v39 = vpop.f32.mrf.mxu0 }
 0xecb   : > { %v2535_v40 = vpop.f32.mrf.mxu0 }
 0xecd   : > { %v3564_v41 = vpop.f32.mrf.mxu0 }
 0xecf   : > { %v2647_v42 = vpop.f32.mrf.mxu0 }
 0xed0   : > { %v2653_v46 = vsel %vm553_vm4, %v2647_v42, -inf }
 0xed1   : > { %v3575_v43 = vpop.f32.mrf.mxu0 }
 0xed2   : > { %2090 = vrot.lane.b32.xlu1 %v4300_v27, %s4658_s16  ;;  %s4666_s16 = smov 8  }
 0xed3   : > { %v2650_v44 = vpop.f32.mrf.mxu0 }
 0xed5   : > { %v3576_v45 = vpop.f32.mrf.mxu0 }
 0xedf   : > { %1975 = vrot.lane.b32.xlu0 %v4300_v27, %s4659_s24  ;;  %s4667_s24 = smov 12  }
 0xef6   : > { %2654 = vmax.xlane.f32.xlu1 %v2653_v46 }
 0xf2a   : > { %v1965_v47 = vpop.xlane.xlu0 %1964 }
 0xf2b   : > { %v1966_v48 = vsub.f32 %v1957_v9, %v1965_v47 }
 0xf2d   : > { %v1967_v49 = vmul.f32 1.442695, %v1966_v48 }
 0xf2f   : > { %3758 = vpow2.f32 %v1967_v49 }
 0xf32   : > { %v2080_v50 = vpop.xlane.xlu1 %2079 }
 0xf33   : > { %v2081_v51 = vsub.f32 %v2072_v16, %v2080_v50 }
 0xf35   : > { %v2082_v52 = vmul.f32 1.442695, %v2081_v51 }
 0xf37   : > { %3760 = vpow2.f32 %v2082_v52 }
 0xf3a   : > { %v2195_v53 = vpop.xlane.xlu0 %2194 }
 0xf3b   : > { %v2196_v54 = vsub.f32 %v2187_v21, %v2195_v53 }
 0xf3c   : > { %v3759_v55 = vpop.eup %3758 }
 0xf3d   : > { %v2197_v56 = vmul.f32 1.442695, %v2196_v54  ;;  %v1969_v57 = vsel %vm553_vm4, %v3759_v55, 0.0 }
 0xf3e   : > { %1970 = vadd.xlane.f32.xlu0 %v1969_v57 }
 0xf3f   : > { %3762 = vpow2.f32 %v2197_v56 }
 0xf42   : > { %v2310_v62 = vpop.xlane.xlu0 %2309 }
 0xf43   : > { %v2311_v3 = vsub.f32 %v2302_v26, %v2310_v62 }
 0xf44   : > { %v3761_v58 = vpop.eup %3760 }
 0xf45   : > { %v2084_v59 = vsel %vm553_vm4, %v3761_v58, 0.0  ;;  %v2312_v5 = vmul.f32 1.442695, %v2311_v3 }
 0xf46   : > { %2085 = vadd.xlane.f32.xlu1 %v2084_v59 }
 0xf47   : > { %3764 = vpow2.f32 %v2312_v5 }
 0xf4a   : > { %v2425_v4 = vpop.xlane.xlu1 %2424 }
 0xf4b   : > { %v2426_v6 = vsub.f32 %v2417_v32, %v2425_v4 }
 0xf4c   : > { %v4396_v60 = vpop.eup %3762 }
 0xf4d   : > { %v2199_v61 = vsel %vm553_vm4, %v4396_v60, 0.0  ;;  %v2427_v7 = vmul.f32 1.442695, %v2426_v6 }
 0xf4e   : > { %2200 = vadd.xlane.f32.xlu0 %v2199_v61  ;;  %v2091_v13 = vpop.permute.xlu1 %2090 }
 0xf4f   : > { %3766 = vpow2.f32 %v2427_v7  ;;  %v2096_v29 = vsel %vm571_vm3, %v2091_v13, 0 }
 0xf52   : > { %v2540_v63 = vpop.xlane.xlu0 %2539 }
 0xf53   : > { %v2541_v8 = vsub.f32 %v2532_v37, %v2540_v63 }
 0xf54   : > { %v3765_v11 = vpop.eup %3764 }
 0xf55   : > { %v2542_v10 = vmul.f32 1.442695, %v2541_v8  ;;  %v2314_v9 = vsel %vm553_vm4, %v3765_v11, 0.0 }
 0xf56   : > { %v1976_v0 = vpop.permute.xlu0 %1975 }
 0xf57   : > { %v1981_v2 = vsel %vm571_vm3, %v1976_v0, 0  ;;  %2205 = vrot.lane.b32.xlu1 %v4300_v27, %s4660_s30  ;;  %3768 = vpow2.f32 %v2542_v10  ;;  %s4668_s30 = smov 16  }
 0xf58   : > { %3506 = vmatpush3.bf16.msra.mxu1 %v1981_v2 }
 0xf59   : > { %3517 = vmatprep.subr.bf16.mxu1 %v3852_v1 }
 0xf5c   : > { %v4407_v12 = vpop.eup %3766 }
 0xf5d   : > { %v2429_v14 = vsel %vm553_vm4, %v4407_v12, 0.0 }
 0xf64   : > { %2320 = vrot.lane.b32.xlu0 %v4300_v27, %s4661_s20  ;;  %v4411_v15 = vpop.eup %3768  ;;  %s4669_s20 = smov 20  }
 0xf65   : > { %v2544_v19 = vsel %vm553_vm4, %v4411_v15, 0.0 }
 0xf7b   : > { %2315 = vadd.xlane.f32.xlu1 %v2314_v9 }
 0xf7f   : > { %2430 = vadd.xlane.f32.xlu1 %v2429_v14  ;;  %v2655_v16 = vpop.xlane.xlu1 %2654 }
 0xf80   : > { %v2656_v17 = vsub.f32 %v2647_v42, %v2655_v16 }
 0xf82   : > { %v2657_v18 = vmul.f32 1.442695, %v2656_v17  ;;  %v3706_v17 = vld [vmem:[%s4640_s3 + $0x18] sm:$0xff]  }
 0xf83   : > { %2545 = vadd.xlane.f32.xlu0 %v2544_v19  ;;  %3584 = vmatpush3.bf16.msra.mxu0 %v3706_v17  ;;  %v3707_v19 = vld [vmem:[%s4640_s3 + $0x10] sm:$0xff]  }
 0xf84   : > { %3770 = vpow2.f32 %v2657_v18  ;;  %3585 = vmatprep.subr.bf16.mxu0 %v3852_v1 }
 0xf87   : > { %3586 = vmatpush3.bf16.msra.mxu0 %v3707_v19 }
 0xf88   : > { %3599 = vmatprep.subr.bf16.mxu0 %v3852_v1 }
 0xf91   : > { %v4415_v20 = vpop.eup %3770 }
 0xf92   : > { %v2659_v21 = vsel %vm553_vm4, %v4415_v20, 0.0 }
 0xf93   : > { %2660 = vadd.xlane.f32.xlu1 %v2659_v21 }
 0xf99   : > { %2550 = vrot.lane.b32.xlu0 %v4300_v27, %s4662_s15 }
 0xf9d   : > { %2665 = vrot.lane.b32.xlu0 %v4300_v27, %s4663_s22 }
 0xfa4   : > { %2435 = vrot.lane.b32.xlu1 %v4300_v27, %s4664_s23  ;;  %s3236_s23 = sshll.u32 %s3976_s29, 7 }
 0xfa5   : > { %s3053_s3 = scalar_lea.hbm %s4599_s13, %s3236_s23 }
 0xfc7   : > { %v1971_v22 = vpop.xlane.xlu0 %1970 }
 0xfc8   : > { %3772 = vrcp.f32 %v1971_v22 }
 0xfcf   : > { %v2086_v23 = vpop.xlane.xlu1 %2085 }
 0xfd0   : > { %3774 = vrcp.f32 %v2086_v23 }
 0xfd3   : > { %v2206_v31 = vpop.permute.xlu1 %2205 }
 0xfd4   : > { %v2211_v33 = vsel %vm571_vm3, %v2206_v31, 0 }
 0xfd5   : > { %v3773_v24 = vpop.eup %3772 }
 0xfd6   : > { %v1973_v25 = vmul.f32 %v3773_v24, %v3759_v55 }
 0xfd7   : > { %v2201_v26 = vpop.xlane.xlu0 %2200 }
 0xfd8   : > { %3776 = vrcp.f32 %v2201_v26  ;;  %v1974_v28 = vpack.c.bf16 %v1973_v25, %v1973_v25 }
 0xfda   : > { %3508 = vmatmul.mubr.msk.bf16.vlgmr.msra.gmra.mxu1 %vm553_vm4, %v1974_v28 }
 0xfdb   : > { %3518 = vmatpush3.bf16.msra.mxu1 %v2096_v29  ;;  %3519 = vmatprep.mubr.msk.bf16.mxu1 %vm3853_vm0, %v3852_v1  ;;  %v2321_v36 = vpop.permute.xlu0 %2320 }
 0xfdc   : > { %3529 = vmatprep.subr.bf16.mxu1 %v3852_v1  ;;  %v2326_v38 = vsel %vm571_vm3, %v2321_v36, 0 }
 0xfdd   : > { %v3775_v27 = vpop.eup %3774 }
 0xfde   : > { %v2088_v30 = vmul.f32 %v3775_v27, %v3761_v58 }
 0xfe0   : > { %v2089_v32 = vpack.c.bf16 %v2088_v30, %v2088_v30 }
 0xfe2   : > { %3520 = vmatmul.mubr.msk.bf16.vlgmr.msra.gmra.mxu1 %vm553_vm4, %v2089_v32 }
 0xfe3   : > { %3530 = vmatpush3.bf16.msra.mxu1 %v2211_v33  ;;  %3531 = vmatprep.mubr.msk.bf16.mxu1 %vm3853_vm0, %v3852_v1 }
 0xfe4   : > { %3541 = vmatprep.subr.bf16.mxu1 %v3852_v1 }
 0xfe5   : > { %v3777_v34 = vpop.eup %3776 }
 0xfe6   : > { %v2203_v35 = vmul.f32 %v3777_v34, %v4396_v60 }
 0xfe8   : > { %v2204_v37 = vpack.c.bf16 %v2203_v35, %v2203_v35 }
 0xfea   : > { %3532 = vmatmul.mubr.msk.bf16.vlgmr.msra.gmra.mxu1 %vm553_vm4, %v2204_v37  ;;  %v3188_v37 = vld [vmem:[%s4641_s4 + $0x1] ss:$0 sm:$0xff] }
 0xfeb   : > { %3542 = vmatpush3.bf16.msra.mxu1 %v2326_v38  ;;  %3543 = vmatprep.mubr.msk.bf16.mxu1 %vm3853_vm0, %v3852_v1 }
 0xfec   : > { %3553 = vmatprep.subr.bf16.mxu1 %v3852_v1 }
0x1004   : > { %v2316_v39 = vpop.xlane.xlu1 %2315 }
0x1005   : > { %3778 = vrcp.f32 %v2316_v39 }
0x1008   : > { %v2431_v40 = vpop.xlane.xlu1 %2430 }
0x1009   : > { %3780 = vrcp.f32 %v2431_v40 }
0x100c   : > { %v2546_v43 = vpop.xlane.xlu0 %2545 }
0x100d   : > { %3782 = vrcp.f32 %v2546_v43 }
0x1010   : > { %v2551_v50 = vpop.permute.xlu0 %2550 }
0x1011   : > { %v2556_v53 = vsel %vm571_vm3, %v2551_v50, 0  ;;  %v3711_v50 = vld [vmem:[%s4595_s9 + $0x70] sm:$0xff]  }
0x1012   : > { %v3779_v41 = vpop.eup %3778 }
0x1013   : > { %v2318_v42 = vmul.f32 %v3779_v41, %v3765_v11 }
0x1014   : > { %v2666_v55 = vpop.permute.xlu0 %2665 }
0x1015   : > { %v2319_v44 = vpack.c.bf16 %v2318_v42, %v2318_v42  ;;  %v2671_v58 = vsel %vm571_vm3, %v2666_v55, 0 }
0x1016   : > { %v3781_v45 = vpop.eup %3780 }
0x1017   : > { %3544 = vmatmul.mubr.msk.bf16.vlgmr.msra.gmra.mxu1 %vm553_vm4, %v2319_v44  ;;  %v2433_v47 = vmul.f32 %v3781_v45, %v4407_v12 }
0x1018   : > { %3555 = vmatprep.mubr.msk.bf16.mxu1 %vm3853_vm0, %v3852_v1 }
0x1019   : > { %v2434_v51 = vpack.c.bf16 %v2433_v47, %v2433_v47  ;;  %v3708_v47 = vld [vmem:[%s4593_s7 + $0x18] sm:$0xff]  }
0x101a   : > { %v3783_v52 = vpop.eup %3782 }
0x101b   : > { %v2548_v54 = vmul.f32 %v3783_v52, %v4411_v15  ;;  %v3713_v52 = vld [vmem:[%s4595_s9 + $0x60] sm:$0xff]  }
0x101c   : > { %v2661_v46 = vpop.xlane.xlu1 %2660 }
0x101d   : > { %3784 = vrcp.f32 %v2661_v46  ;;  %v2549_v56 = vpack.c.bf16 %v2548_v54, %v2548_v54  ;;  %v3715_v54 = vld [vmem:[%s4595_s9 + $0x50] sm:$0xff]  }
0x1020   : > { %v2436_v48 = vpop.permute.xlu1 %2435 }
0x1021   : > { %v2441_v49 = vsel %vm571_vm3, %v2436_v48, 0  ;;  %v3709_v48 = vld [vmem:[%s4593_s7 + $0x10] sm:$0xff]  }
0x1022   : > { %3554 = vmatpush3.bf16.msra.mxu1 %v2441_v49  ;;  %v3710_v49 = vld [vmem:[%s4595_s9 + $0x78] sm:$0xff]  }
0x1023   : > { %3565 = vmatprep.subr.bf16.mxu1 %v3852_v1 }
0x1025   : > { %3556 = vmatmul.mubr.msk.bf16.vlgmr.msra.gmra.mxu1 %vm553_vm4, %v2434_v51  ;;  %v3712_v51 = vld [vmem:[%s4595_s9 + $0x68] sm:$0xff]  }
0x1026   : > { %3566 = vmatpush3.bf16.msra.mxu1 %v2556_v53  ;;  %3567 = vmatprep.mubr.msk.bf16.mxu1 %vm3853_vm0, %v3852_v1  ;;  %v3714_v53 = vld [vmem:[%s4595_s9 + $0x58] sm:$0xff]  }
0x1027   : > { %3577 = vmatprep.subr.bf16.mxu1 %v3852_v1 }
0x102a   : > { %v3785_v57 = vpop.eup %3784 }
0x102b   : > { %v2663_v59 = vmul.f32 %v3785_v57, %v4415_v20 }
0x102d   : > { %3568 = vmatmul.mubr.msk.bf16.vlgmr.msra.gmra.mxu1 %vm553_vm4, %v2549_v56  ;;  %v2664_v60 = vpack.c.bf16 %v2663_v59, %v2663_v59 }
0x102e   : > { %3578 = vmatpush3.bf16.msra.mxu1 %v2671_v58  ;;  %3579 = vmatprep.mubr.msk.bf16.mxu1 %vm3853_vm0, %v3852_v1 }
0x102f   : > { %3591 = vmatprep.subr.bf16.mxu1 %v3852_v1 }
0x1035   : > { %3580 = vmatmul.mubr.msk.bf16.vlgmr.msra.gmra.mxu1 %vm553_vm4, %v2664_v60 }
0x1036   : > { %3595 = vmatprep.mubr.msk.bf16.mxu1 %vm3853_vm0, %v3852_v1  ;;  %3592 = vmatpush3.bf16.msra.mxu1 %v3708_v47 }
0x1037   : > { %3593 = vmatprep.subr.bf16.mxu1 %v3852_v1 }
0x103a   : > { %3594 = vmatpush3.bf16.msra.mxu1 %v3709_v48 }
0x109a   : > { %v2017_v61 = vpop.f32.mrf.mxu1 }
0x109b   : > { %2024 = vrot.lane.b32.xlu1 %v2017_v61, %s4665_s21 }
0x109c   : > { %v3509_v62 = vpop.f32.mrf.mxu1 }
0x109e   : > { %v2020_v63 = vpop.f32.mrf.mxu1 }
0x10a0   : > { %v3510_v0 = vpop.f32.mrf.mxu1 }
0x10a1   : > { %v3194_v0 = vld [vmem:[%s4591_s5 + $0x1] ss:$0 sm:$0xff] }
0x10a2   : > { %v2132_v2 = vpop.f32.mrf.mxu1 }
0x10a3   : > { %2139 = vrot.lane.b32.xlu0 %v2132_v2, %s4666_s16  ;;  %s4670_s16 = smov 24  }
0x10a4   : > { %v3521_v3 = vpop.f32.mrf.mxu1 }
0x10a5   : > { %v3195_v3 = vld [vmem:[%s4592_s6 + $0x1] ss:$0 sm:$0xff] }
0x10a6   : > { %v2135_v4 = vpop.f32.mrf.mxu1 }
0x10a8   : > { %v3522_v5 = vpop.f32.mrf.mxu1 }
0x10aa   : > { %v2247_v6 = vpop.f32.mrf.mxu1 }
0x10ab   : > { %2254 = vrot.lane.b32.xlu1 %v2247_v6, %s4667_s24  ;;  %s4671_s24 = smov 28  }
0x10ac   : > { %v3533_v7 = vpop.f32.mrf.mxu1 }
0x10ad   : > { %v3716_v7 = vld [vmem:[%s4595_s9 + $0x48] sm:$0xff]  }
0x10ae   : > { %v2250_v8 = vpop.f32.mrf.mxu1 }
0x10af   : > { %v3717_v8 = vld [vmem:[%s4595_s9 + $0x40] sm:$0xff]  }
0x10b0   : > { %v3534_v10 = vpop.f32.mrf.mxu1 }
0x10b1   : > { %v3201_v10 = vld [vmem:[%s4594_s8 + $0x1] ss:$0 sm:$0xff] }
0x10d7   : > { %v2362_v11 = vpop.f32.mrf.mxu1 }
0x10d8   : > { %2369 = vrot.lane.b32.xlu0 %v2362_v11, %s4668_s30 }
0x10d9   : > { %v3545_v9 = vpop.f32.mrf.mxu1 }
0x10db   : > { %v2365_v12 = vpop.f32.mrf.mxu1 }
0x10dd   : > { %v3546_v13 = vpop.f32.mrf.mxu1 }
0x10e5   : > { %v2477_v14 = vpop.f32.mrf.mxu1 }
0x10e6   : > { %2484 = vrot.lane.b32.xlu1 %v2477_v14, %s4669_s20  ;;  %s3884_s20 = smov [#allocation3]  }
0x10e7   : > { %v3557_v15 = vpop.f32.mrf.mxu1  ;;  %s3794_s15 = sshll.u32 %s3884_s20, 4  ;;  %s3795_s15 = int_to_ptr.vmem [resolvable:$false] %s3794_s15 }
0x10e8   : > { %s3796_s29 = scalar_lea.vmem %s3795_s15, 256 }
0x10e9   : > { %v2480_v16 = vpop.f32.mrf.mxu1 }
0x10eb   : > { %v3558_v18 = vpop.f32.mrf.mxu1 }
0x10ed   : > { %v2592_v20 = vpop.f32.mrf.mxu1 }
0x10ee   : > { %2599 = vrot.lane.b32.xlu0 %v2592_v20, %s4670_s16  ;;  %s429_s16 = sand.u32 1, %s3842_s26  }
0x10ef   : > { %v3569_v21 = vpop.f32.mrf.mxu1  ;;  %s3042_s4 = scalar_lea.sflag [#allocation4], %s429_s16 }
0x10f1   : > { %v2595_v22 = vpop.f32.mrf.mxu1 }
0x10f3   : > { %v3570_v23 = vpop.f32.mrf.mxu1 }
0x10f5   : > { %v2707_v24 = vpop.f32.mrf.mxu1 }
0x10f6   : > { %2714 = vrot.lane.b32.xlu1 %v2707_v24, %s4671_s24  ;;  %s3118_s24 = sshll.u32 %s429_s16, 3 }
0x10f7   : > { %v3581_v25 = vpop.f32.mrf.mxu1  ;;  %s431_s21 = scalar_lea.vmem [#allocation3], %s3118_s24 }
0x10f8   : > { %s3055_s0 = sshll.u32 %s431_s21, 4  ;;  %s3056_s0 = int_to_ptr.vmem [resolvable:$true] %s3055_s0 }
0x10f9   : > { %v2710_v26 = vpop.f32.mrf.mxu1  ;;  %s3790_s30 = scalar_lea.vmem %s3056_s0, 128  ;;  %p3797_p0 = scmp.lt.s32.totalorder %s3056_s0, %s3795_s15 }
0x10fa   : > { %p3791_p11 = scmp.ne.s32.totalorder %s3056_s0, %s3790_s30  ;;  %p3798_p1 = scmp.lt.s32.totalorder %s3796_s29, %s3790_s30 }
0x10fb   : > { %v3582_v28 = vpop.f32.mrf.mxu1 }
0x10fc   : > { %p3792_p12 = pnand %p3791_p11, %p3993_p5  ;;  %p3799_p2 = por %p3798_p1, %p3797_p0 }
0x10fe   : > { %p3793_p13 = pneg %p3792_p12 }
0x1100   : > { %p3800_p3 = pnand %p3799_p2, %p3793_p13 }
0x110d   : > { %v2025_v29 = vpop.permute.xlu1 %2024 }
0x110e   : > { %2027 = vst.msk [vmem:[#allocation2] sm:$0xff] %vm730_vm5, %v2025_v29 }
0x1115   : > { %v2140_v27 = vpop.permute.xlu0 %2139 }
0x1116   : > { %2142 = vst.msk [vmem:[#allocation2] sm:$0xff] %vm846_vm6, %v2140_v27 }
0x111d   : > { %v2255_v30 = vpop.permute.xlu1 %2254 }
0x111e   : > { %2257 = vst.msk [vmem:[#allocation2] sm:$0xff] %vm962_vm7, %v2255_v30 }
0x114a   : > { %v2370_v31 = vpop.permute.xlu0 %2369 }
0x114b   : > { %2372 = vst.msk [vmem:[#allocation2] sm:$0xff] %vm1078_vm8, %v2370_v31 }
0x1158   : > { %v2485_v32 = vpop.permute.xlu1 %2484 }
0x1159   : > { %2487 = vst.msk [vmem:[#allocation2] sm:$0xff] %vm1194_vm9, %v2485_v32 }
0x1160   : > { %v2600_v33 = vpop.permute.xlu0 %2599 }
0x1161   : > { %2602 = vst.msk [vmem:[#allocation2] sm:$0xff] %vm1310_vm10, %v2600_v33 }
0x1168   : > { %v2715_v34 = vpop.permute.xlu1 %2714 }
0x1169   : > { %2717 = vst.msk [vmem:[#allocation2] sm:$0xff] %vm1426_vm11, %v2715_v34 }
0x1170   : > { %v2718_v35 = vld [vmem:[#allocation2] sm:$0xff] }
0x1171   : > { %v2719_v36 = vpack.c.bf16 %v2718_v35, %v2718_v35  ;;  %v3233_v35 = vld [vmem:[%s4597_s11 + $0x1] ss:$0 sm:$0xff] }
0x1173   : > { %3588 = vmatmul.mubr.msk.bf16.vlgmr.msra.gmra.mxu0 %vm458_vm1, %v2719_v36 }
0x1174   : > { %3615 = vmatprep.mubr.msk.bf16.mxu0 %vm3853_vm0, %v3852_v1  ;;  %3600 = vmatpush3.bf16.msra.mxu0 %v3710_v49 }
0x1175   : > { %3601 = vmatprep.subr.bf16.mxu0 %v3852_v1 }
0x1178   : > { %3602 = vmatpush3.bf16.msra.mxu0 %v3711_v50 }
0x1179   : > { %3603 = vmatprep.subr.bf16.mxu0 %v3852_v1 }
0x117c   : > { %3604 = vmatpush3.bf16.msra.mxu0 %v3712_v51 }
0x117d   : > { %3605 = vmatprep.subr.bf16.mxu0 %v3852_v1 }
0x1180   : > { %3606 = vmatpush3.bf16.msra.mxu0 %v3713_v52 }
0x1181   : > { %3607 = vmatprep.subr.bf16.mxu0 %v3852_v1 }
0x1184   : > { %3608 = vmatpush3.bf16.msra.mxu0 %v3714_v53 }
0x1185   : > { %3609 = vmatprep.subr.bf16.mxu0 %v3852_v1 }
0x1188   : > { %3610 = vmatpush3.bf16.msra.mxu0 %v3715_v54 }
0x1189   : > { %3611 = vmatprep.subr.bf16.mxu0 %v3852_v1 }
0x118c   : > { %3612 = vmatpush3.bf16.msra.mxu0 %v3716_v7 }
0x118d   : > { %3613 = vmatprep.subr.bf16.mxu0 %v3852_v1  ;;  %v3222_v1 = vld [vmem:[%s4596_s10 + $0x1] ss:$0 sm:$0xff] }
0x1190   : > { %3614 = vmatpush3.bf16.msra.mxu0 %v3717_v8 }
0x1233   : > { %v2782_v38 = vpop.f32.mrf.mxu0 }
0x1234   : > { %v2783_v39 = vadd.f32 %v3188_v37, %v2782_v38  ;;  %v3234_v37 = vld [vmem:[%s4598_s12 + $0x1] ss:$0 sm:$0xff] }
0x1235   : > { %v3589_v40 = vpop.f32.mrf.mxu0 }
0x1236   : > { %v2788_v41 = vadd.f32 %v2783_v39, %v2783_v39 }
0x1237   : > { %v2785_v42 = vpop.f32.mrf.mxu0 }
0x1238   : > { %v2793_v43 = vsel %vm458_vm1, %v2788_v41, 0.0  ;;  %v2797_v44 = vmul.f32 %v2788_v41, %v2788_v41 }
0x1239   : > { %2794 = vadd.xlane.f32.xlu0 %v2793_v43  ;;  %v3590_v45 = vpop.f32.mrf.mxu0 }
0x123a   : > { %v2798_v46 = vsel %vm458_vm1, %v2797_v44, 0.0 }
0x123b   : > { %2799 = vadd.xlane.f32.xlu1 %v2798_v46 }
0x12c2   : > { %v2795_v55 = vpop.xlane.xlu0 %2794 }
0x12c3   : > { %v2796_v56 = vmul.f32 0.03125, %v2795_v55 }
0x12c4   : > { %v2800_v57 = vpop.xlane.xlu1 %2799 }
0x12c5   : > { %v2802_v58 = vmul.f32 %v2796_v56, %v2796_v56  ;;  %v2801_v59 = vmul.f32 0.03125, %v2800_v57  ;;  %v2804_v62 = vsub.f32 %v2788_v41, %v2796_v56 }
0x12c7   : > { %v2803_v60 = vsub.f32 %v2801_v59, %v2802_v58 }
0x12c9   : > { %v2805_v61 = vadd.f32 1e-05, %v2803_v60 }
0x12cb   : > { %3786 = vrsqrt.f32 %v2805_v61 }
0x12d8   : > { %v3787_v63 = vpop.eup %3786 }
0x12d9   : > { %v2807_v2 = vmul.f32 %v3787_v63, %v2804_v62 }
0x12db   : > { %v2814_v4 = vmul.f32 %v3194_v0, %v2807_v2 }
0x12dd   : > { %v2821_v5 = vadd.f32 %v3195_v3, %v2814_v4 }
0x12df   : > { %v2822_v6 = vpack.c.bf16 %v2821_v5, %v2821_v5 }
0x12e1   : > { %3596 = vmatmul.mubr.msk.bf16.vlgmr.msra.gmra.mxu1 %vm458_vm1, %v2822_v6 }
0x13a1   : > { %v2885_v11 = vpop.f32.mrf.mxu1 }
0x13a2   : > { %v2886_v9 = vadd.f32 %v3201_v10, %v2885_v11 }
0x13a3   : > { %v3597_v12 = vpop.f32.mrf.mxu1 }
0x13a4   : > { %v2891_v13 = vmax.f32 %v2886_v9, 0.0 }
0x13a5   : > { %v2888_v14 = vpop.f32.mrf.mxu1 }
0x13a6   : > { %v2892_v15 = vpack.c.bf16 %v2891_v13, %v2891_v13 }
0x13a7   : > { %v3598_v16 = vpop.f32.mrf.mxu1 }
0x13a8   : > { %3616 = vmatmul.mubr.bf16.vlgmr.msra.gmra.mxu0 %v2892_v15 }
0x1468   : > { %v3000_v17 = vpop.f32.mrf.mxu0 }
0x1469   : > { %v3001_v18 = vadd.f32 %v3222_v1, %v3000_v17 }
0x146a   : > { %v3617_v19 = vpop.f32.mrf.mxu0 }
0x146b   : > { %v3006_v20 = vadd.f32 %v3001_v18, %v2821_v5 }
0x146c   : > { %v3003_v21 = vpop.f32.mrf.mxu0 }
0x146d   : > { %v3011_v22 = vsel %vm458_vm1, %v3006_v20, 0.0  ;;  %v3015_v23 = vmul.f32 %v3006_v20, %v3006_v20 }
0x146e   : > { %3012 = vadd.xlane.f32.xlu0 %v3011_v22  ;;  %v3618_v24 = vpop.f32.mrf.mxu0 }
0x146f   : > { %v3016_v25 = vsel %vm458_vm1, %v3015_v23, 0.0 }
0x1472   : > { %3017 = vadd.xlane.f32.xlu0 %v3016_v25 }
0x14f7   : > { %v3013_v26 = vpop.xlane.xlu0 %3012 }
0x14f8   : > { %v3014_v28 = vmul.f32 0.03125, %v3013_v26 }
0x14fa   : > { %v3020_v27 = vmul.f32 %v3014_v28, %v3014_v28  ;;  %v3022_v33 = vsub.f32 %v3006_v20, %v3014_v28 }
0x14fb   : > { %v3018_v29 = vpop.xlane.xlu0 %3017 }
0x14fc   : > { %v3019_v30 = vmul.f32 0.03125, %v3018_v29 }
0x14fe   : > { %v3021_v31 = vsub.f32 %v3019_v30, %v3020_v27 }
0x1500   : > { %v3023_v32 = vadd.f32 1e-05, %v3021_v31 }
0x1502   : > { %3788 = vrsqrt.f32 %v3023_v32 }
0x150f   : > { %v3789_v34 = vpop.eup %3788 }
0x1510   : > { %v3025_v36 = vmul.f32 %v3789_v34, %v3022_v33 }
0x1512   : > { %v3032_v38 = vmul.f32 %v3233_v35, %v3025_v36 }
0x1514   : > { %v3039_v39 = vadd.f32 %v3234_v37, %v3032_v38 }
0x1516   : > { %3040 = vst.msk [vmem:[%s431_s21] sm:$0xff] %vm458_vm1, %v3039_v39 }
0x1517   : > { %3803 = shalt.err (!%p3800_p3)
}
0x1518   : > { %s3804_s1 = scalar_lea.hbm %s3053_s3, 128  ;;  %s3808_s24 = scalar_lea.hbm %s4599_s13, 256 }
0x1519   : > { %p3805_p4 = scmp.ne.s32.totalorder %s3053_s3, %s3804_s1  ;;  %p3809_p9 = scmp.lt.s32.totalorder %s3053_s3, %s4599_s13 }
0x151a   : > { %p3810_p10 = scmp.lt.s32.totalorder %s3808_s24, %s3804_s1 }
0x151b   : > { %p3806_p7 = pnand %p3805_p4, %p3993_p5 }
0x151c   : > { %p3811_p11 = por %p3810_p10, %p3809_p9 }
0x151d   : > { %p3807_p8 = pneg %p3806_p7 }
0x151f   : > { %p3812_p12 = pnand %p3811_p11, %p3807_p8 }
0x1521   : > { %3815 = shalt.err (!%p3812_p12)
}
0x1522   : > { %3619 = dma.vmem_to_hbm [thread:$0]  (%p3993_p5), %s3056_s0, 128, %s3053_s3, %s3042_s4  }
0x1523 PF: > { %p3625_p13 = scmp.ge.s32.totalorder %s3850_s28, 2  ;;  %s3067_s21 = sand.u32 1, %s3838_s25  }
0x1524   : > { %s3068_s30 = scalar_lea.sflag [#allocation4], %s3067_s21 }
0x1525   : > { %p3622_p0 = pnand %p3625_p13, %p3997_p6 }
0x1527   : > { %p3623_p1 = pneg %p3622_p0 }
0x1529   : > { %3833 = dma.done.wait (%p3623_p1), %s3068_s30, 128  }
0x152a   : > { %3835 = vsyncadd (%p3623_p1), %s3068_s30, 4294967168  ;;  %p23_p2 = scmp.ge.s32.totalorder %s3980_s14, 4   ;;  %s4672_s25 = smov %s3842_s26 }
0x152b   : > { %s4673_s26 = smov %s3846_s27  ;;  %s4674_s27 = smov %s3991_s17 }
0x152c   : > { %s4675_s28 = smov %s3980_s14  ;;  %25 = sbr.rel (!%p23_p2) target bundleno = 9 (0x9), region = 118 }
0x1531   :  { %3073 = vsyncpa [#allocation4], 1 }
0x1532   :  { %3075 = vsyncpa [#allocation4 + $0x1], 1 }

</bundles_post_ra>
